<compile_context>
chip_gen: v7x
topology: tpu7x:2x2x1
jax: 0.10.0
libtpu: 0.0.40
codegen_flags: <defaults>
</compile_context>

<pallas_src>
import functools

import jax
import jax.numpy as jnp
import numpy as np
from jax.experimental import pallas as pl
from jax.experimental.pallas import tpu as pltpu


def _nrde_kernel(h0_ref, logsig_ref, x_ref,
                 w1h_ref, w1x_ref, b1_ref,
                 wmid_ref, bmid_ref,
                 wout_ref, bout_ref,
                 tmat_ref, smat_ref,
                 hseq_ref,
                 h_scr,
                 *, num_layers, steps_per_interval):
    f32 = jnp.float32
    i = pl.program_id(1)                      # interval index (sequential axis)
    TB = h0_ref.shape[0]
    hh = b1_ref.shape[1]
    flat = wout_ref.shape[1]                  # hidden * logsig_dim

    # Start of a new batch tile: seed the carried hidden state.
    @pl.when(i == 0)
    def _():
        h_scr[...] = h0_ref[...]

    # Hoist weight loads / bias broadcasts out of the unrolled sub-step loop
    # (broadcast_in_dim is not CSE'd by JAX).
    w1h = w1h_ref[...]                                         # (hidden, hh)
    w1x = w1x_ref[...]                                         # (1, hh)
    b1 = jnp.broadcast_to(b1_ref[...], (TB, hh))
    wmids = [wmid_ref[l] for l in range(num_layers - 1)]       # static unroll
    bmids = [jnp.broadcast_to(bmid_ref[l], (TB, hh)) for l in range(num_layers - 1)]
    wout = wout_ref[...]                                       # (hh, hidden*D)
    bout = jnp.broadcast_to(bout_ref[...], (TB, flat))
    smat = smat_ref[...]                                       # odestep folded in

    # Replicate this interval's logsig to the flattened (hidden*D) layout via a
    # constant 0/1 matmul so the batched contraction stays 2-D / MXU-friendly.
    ls_tiled = jnp.dot(logsig_ref[0], tmat_ref[...], preferred_element_type=f32)

    h = h_scr[...]
    # Fully-unrolled Euler sub-steps: static trip count, static x indexing.
    for k in range(steps_per_interval):
        x_col = x_ref[k]                                       # (TB, 1), static index
        z = jnp.dot(h, w1h, preferred_element_type=f32) + x_col * w1x + b1
        for l in range(num_layers - 1):
            z = jnp.dot(jnp.maximum(z, 0.0), wmids[l],
                        preferred_element_type=f32) + bmids[l]
        z = jnp.tanh(z)
        # flattened vector field A_flat[b, j*D + d] = A[b, j, d]
        a_flat = jnp.dot(z, wout, preferred_element_type=f32) + bout
        # dh[b, j] = odestep * sum_d A[b, j, d] * logsig[b, d]  (block-sum matmul)
        h = h + jnp.dot(a_flat * ls_tiled, smat, preferred_element_type=f32)

    h_scr[...] = h
    hseq_ref[0] = h.astype(hseq_ref.dtype)                     # hidden state at knot i+1


def init_params(key, *, initial_dim, logsig_dim, hidden_dim, hidden_hidden_dim,
                output_dim, num_layers):
    """Deterministic params, PyTorch-Linear-style uniform init, stored as (in, out)."""
    def linear(k, fan_in, fan_out):
        kw, kb = jax.random.split(k)
        bound = 1.0 / float(np.sqrt(fan_in))
        w = jax.random.uniform(kw, (fan_in, fan_out), jnp.float32, -bound, bound)
        b = jax.random.uniform(kb, (1, fan_out), jnp.float32, -bound, bound)
        return w, b

    keys = jax.random.split(key, num_layers + 3)
    w0, b0 = linear(keys[0], initial_dim, hidden_dim)
    w1, b1 = linear(keys[1], hidden_dim + 1, hidden_hidden_dim)
    w1h, w1x = w1[:hidden_dim], w1[hidden_dim:hidden_dim + 1]
    n_mid = max(num_layers - 1, 1)
    wmid = jnp.zeros((n_mid, hidden_hidden_dim, hidden_hidden_dim), jnp.float32)
    bmid = jnp.zeros((n_mid, 1, hidden_hidden_dim), jnp.float32)
    for l in range(num_layers - 1):
        wl, bl = linear(keys[2 + l], hidden_hidden_dim, hidden_hidden_dim)
        wmid = wmid.at[l].set(wl)
        bmid = bmid.at[l].set(bl)
    wout, bout = linear(keys[num_layers + 1], hidden_hidden_dim, hidden_dim * logsig_dim)
    wf, bf = linear(keys[num_layers + 2], hidden_dim, output_dim)
    return dict(w0=w0, b0=b0, w1h=w1h, w1x=w1x, b1=b1, wmid=wmid, bmid=bmid,
                wout=wout, bout=bout, wf=wf, bf=bf, num_layers=num_layers)


def neural_rde_forward(initial, logsig, x, params, *, odestep=0.1):
    B, _ = initial.shape
    _, L, D = logsig.shape
    steps = int(round(1.0 / odestep))
    assert x.shape[0] == B and x.shape[1] >= L * steps and x.shape[2] == 1
    hidden = params['w0'].shape[1]
    nl = params['num_layers']

    # Pad batch to a sublane-friendly tile (vregs are 8 sublanes x 128 lanes).
    TB = min(32, ((B + 7) // 8) * 8)
    Bp = ((B + TB - 1) // TB) * TB
    nb = Bp // TB
    pad = Bp - B

    initial_p = jnp.pad(initial.astype(jnp.float32), ((0, pad), (0, 0)))
    logsig_p = jnp.pad(logsig.astype(jnp.float32), ((0, pad), (0, 0), (0, 0)))
    x_p = jnp.pad(x.astype(jnp.float32), ((0, pad), (0, 0), (0, 0)))

    # Initial linear runs in XLA (outside the ODE in the original module too).
    h0 = initial_p @ params['w0'] + params['b0']                       # (Bp, hidden)

    # Time-major layouts so the interval grid axis indexes the leading dim.
    logsig_t = jnp.transpose(logsig_p, (1, 0, 2))                      # (L, Bp, D)
    x_t = jnp.transpose(x_p, (1, 0, 2))[:L * steps]                    # (L*steps, Bp, 1)

    # Constant 0/1 matrices for the batched (B,hidden,D)x(B,D) contraction.
    tmat = jnp.tile(jnp.eye(D, dtype=jnp.float32), (1, hidden))        # (D, hidden*D)
    smat = float(odestep) * jnp.repeat(jnp.eye(hidden, dtype=jnp.float32), D, axis=0)

    def rep(shape):  # replicated (whole-array) param block
        nd = len(shape)
        return pl.BlockSpec(shape, lambda b, i, _nd=nd: (0,) * _nd)

    in_specs = [
        pl.BlockSpec((TB, hidden), lambda b, i: (b, 0)),               # h0
        pl.BlockSpec((1, TB, D), lambda b, i: (i, b, 0)),              # logsig per interval
        pl.BlockSpec((steps, TB, 1), lambda b, i: (i, b, 0)),          # x per interval
        rep(params['w1h'].shape), rep(params['w1x'].shape), rep(params['b1'].shape),
        rep(params['wmid'].shape), rep(params['bmid'].shape),
        rep(params['wout'].shape), rep(params['bout'].shape),
        rep(tmat.shape), rep(smat.shape),
    ]
    out_specs = pl.BlockSpec((1, TB, hidden), lambda b, i: (i, b, 0))

    # Explicit VMEM budget: resident params + double-buffered streamed tiles + headroom.
    resident = 4 * sum(int(np.prod(a.shape)) for a in
                       (params['w1h'], params['w1x'], params['b1'],
                        params['wmid'], params['bmid'],
                        params['wout'], params['bout'], tmat, smat))
    streamed = 2 * 4 * (TB * hidden + TB * D + steps * TB + TB * hidden)
    vmem_limit = int(min(128 << 20, max(32 << 20, 4 * (resident + streamed) + (4 << 20))))

    kernel = functools.partial(_nrde_kernel, num_layers=nl, steps_per_interval=steps)

    h_seq = pl.pallas_call(
        kernel,
        out_shape=jax.ShapeDtypeStruct((L, Bp, hidden), jnp.float32),
        grid=(nb, L),
        in_specs=in_specs,
        out_specs=out_specs,
        scratch_shapes=[pltpu.VMEM((TB, hidden), jnp.float32)],        # carried hidden state
        compiler_params=pltpu.CompilerParams(
            dimension_semantics=("parallel", "arbitrary"),
            vmem_limit_bytes=vmem_limit),
    )(h0, logsig_t, x_t,
      params['w1h'], params['w1x'], params['b1'],
      params['wmid'], params['bmid'],
      params['wout'], params['bout'],
      tmat, smat)

    # Deferred readout: one dense matmul over all knots (instead of L+1 tiny ones).
    h_all = jnp.concatenate([h0[None], h_seq], axis=0)                 # (L+1, Bp, hidden)
    out = jnp.einsum('tbh,ho->tbo', h_all, params['wf']) + params['bf']
    return jnp.transpose(out, (1, 0, 2))[:B]                           # (B, L+1, output_dim)


def neural_rde_reference(initial, logsig, x, params, *, odestep=0.1):
    """Pure-JAX mirror of the PyTorch forward (for validation)."""
    B, _ = initial.shape
    _, L, D = logsig.shape
    steps = int(round(1.0 / odestep))
    hidden = params['w0'].shape[1]
    nl = params['num_layers']
    w1 = jnp.concatenate([params['w1h'], params['w1x']], axis=0)
    h = initial @ params['w0'] + params['b0']
    outs = [h @ params['wf'] + params['bf']]
    for i in range(L):
        ls = logsig[:, i, :]
        for k in range(steps):
            idx = i * steps + k
            z = jnp.concatenate([h, x[:, idx, :]], axis=1) @ w1 + params['b1']
            for l in range(nl - 1):
                z = jnp.maximum(z, 0.0) @ params['wmid'][l] + params['bmid'][l]
            z = jnp.tanh(z)
            A = (z @ params['wout'] + params['bout']).reshape(B, hidden, D)
            dh = jnp.einsum('bhd,bd->bh', A, ls)
            h = h + odestep * dh
        outs.append(h @ params['wf'] + params['bf'])
    return jnp.stack(outs, axis=1)


if __name__ == "__main__":
    B = 4
    initial_dim = 6
    logsig_dim = 7
    hidden_dim = 16
    hidden_hidden_dim = 32
    output_dim = 3
    num_layers = 3
    L = 4                     # number of log-signature intervals
    odestep = 0.1
    steps = int(round(1.0 / odestep))
    T_x = L * steps           # x sampled at the Euler sub-step resolution

    key = jax.random.PRNGKey(0)
    k_init, k_ls, k_x, k_par = jax.random.split(key, 4)
    initial = jax.random.normal(k_init, (B, initial_dim), jnp.float32)
    logsig = 0.1 * jax.random.normal(k_ls, (B, L, logsig_dim), jnp.float32)
    x = jax.random.normal(k_x, (B, T_x, 1), jnp.float32)

    params = init_params(k_par, initial_dim=initial_dim, logsig_dim=logsig_dim,
                         hidden_dim=hidden_dim, hidden_hidden_dim=hidden_hidden_dim,
                         output_dim=output_dim, num_layers=num_layers)

    out = jax.block_until_ready(
        neural_rde_forward(initial, logsig, x, params, odestep=odestep))
    ref = jax.block_until_ready(
        neural_rde_reference(initial, logsig, x, params, odestep=odestep))

    assert out.shape == (B, L + 1, output_dim), out.shape
    np.testing.assert_allclose(np.asarray(out), np.asarray(ref), rtol=1e-4, atol=1e-4)
    print("KERNEL_OK")
</pallas_src>

<mosaic_0001>
module attributes {stable_mosaic.version = 11 : i64} {
  func.func @_nrde_kernel(%arg0: i32, %arg1: i32, %arg2: memref<8x16xf32, #tpu.memory_space<vmem>>, %arg3: memref<1x8x7xf32, #tpu.memory_space<vmem>>, %arg4: memref<10x8x1xf32, #tpu.memory_space<vmem>>, %arg5: memref<16x32xf32, #tpu.memory_space<vmem>>, %arg6: memref<1x32xf32, #tpu.memory_space<vmem>>, %arg7: memref<1x32xf32, #tpu.memory_space<vmem>>, %arg8: memref<2x32x32xf32, #tpu.memory_space<vmem>>, %arg9: memref<2x1x32xf32, #tpu.memory_space<vmem>>, %arg10: memref<32x112xf32, #tpu.memory_space<vmem>>, %arg11: memref<1x112xf32, #tpu.memory_space<vmem>>, %arg12: memref<7x112xf32, #tpu.memory_space<vmem>>, %arg13: memref<112x16xf32, #tpu.memory_space<vmem>>, %arg14: memref<1x8x16xf32, #tpu.memory_space<vmem>>, %arg15: memref<8x16xf32, #tpu.memory_space<vmem>>) attributes {dimension_semantics = [#tpu.dimension_semantics<parallel>, #tpu.dimension_semantics<arbitrary>], iteration_bounds = array<i64: 1, 4>, scalar_prefetch = 0 : i64, scratch_operands = 1 : i64, tpu.core_type = #tpu.core_type<tc>, window_params = [{transform_indices = @transform_0, window_bounds = array<i64: 8, 16>}, {transform_indices = @transform_1, window_bounds = array<i64: 1, 8, 7>}, {transform_indices = @transform_2, window_bounds = array<i64: 10, 8, 1>}, {pipeline_mode = #tpu.pipeline_mode<synchronous>, transform_indices = @transform_3, window_bounds = array<i64: 16, 32>}, {pipeline_mode = #tpu.pipeline_mode<synchronous>, transform_indices = @transform_4, window_bounds = array<i64: 1, 32>}, {pipeline_mode = #tpu.pipeline_mode<synchronous>, transform_indices = @transform_5, window_bounds = array<i64: 1, 32>}, {pipeline_mode = #tpu.pipeline_mode<synchronous>, transform_indices = @transform_6, window_bounds = array<i64: 2, 32, 32>}, {pipeline_mode = #tpu.pipeline_mode<synchronous>, transform_indices = @transform_7, window_bounds = array<i64: 2, 1, 32>}, {pipeline_mode = #tpu.pipeline_mode<synchronous>, transform_indices = @transform_8, window_bounds = array<i64: 32, 112>}, {pipeline_mode = #tpu.pipeline_mode<synchronous>, transform_indices = @transform_9, window_bounds = array<i64: 1, 112>}, {pipeline_mode = #tpu.pipeline_mode<synchronous>, transform_indices = @transform_10, window_bounds = array<i64: 7, 112>}, {pipeline_mode = #tpu.pipeline_mode<synchronous>, transform_indices = @transform_11, window_bounds = array<i64: 112, 16>}, {transform_indices = @transform_12, window_bounds = array<i64: 1, 8, 16>}]} {
    %c0_i32 = arith.constant 0 : i32
    %0 = arith.cmpi eq, %arg1, %c0_i32 : i32
    %1 = arith.extui %0 : i1 to i32
    %c0_i32_0 = arith.constant 0 : i32
    %2 = arith.cmpi ne, %1, %c0_i32_0 : i32
    scf.if %2 {
      %c0_127 = arith.constant 0 : index
      %c0_128 = arith.constant 0 : index
      %254 = vector.load %arg2[%c0_127, %c0_128] : memref<8x16xf32, #tpu.memory_space<vmem>>, vector<8x16xf32>
      %c0_129 = arith.constant 0 : index
      %c0_130 = arith.constant 0 : index
      %255 = vector.load %arg15[%c0_129, %c0_130] : memref<8x16xf32, #tpu.memory_space<vmem>>, vector<8x16xf32>
      tpu.vector_store %arg15[%c0_129, %c0_130], %254 {strides = array<i32>} : memref<8x16xf32, #tpu.memory_space<vmem>>, vector<8x16xf32>,
    } else {
    }
    %c0 = arith.constant 0 : index
    %c0_1 = arith.constant 0 : index
    %3 = vector.load %arg5[%c0, %c0_1] : memref<16x32xf32, #tpu.memory_space<vmem>>, vector<16x32xf32>
    %c0_2 = arith.constant 0 : index
    %c0_3 = arith.constant 0 : index
    %4 = vector.load %arg6[%c0_2, %c0_3] : memref<1x32xf32, #tpu.memory_space<vmem>>, vector<1x32xf32>
    %c0_4 = arith.constant 0 : index
    %c0_5 = arith.constant 0 : index
    %5 = vector.load %arg7[%c0_4, %c0_5] : memref<1x32xf32, #tpu.memory_space<vmem>>, vector<1x32xf32>
    %6 = vector.shape_cast %5 : vector<1x32xf32> to vector<1x32xf32>
    %7 = vector.broadcast %6 : vector<1x32xf32> to vector<8x32xf32>
    %c0_6 = arith.constant 0 : index
    %c0_7 = arith.constant 0 : index
    %c0_8 = arith.constant 0 : index
    %8 = vector.load %arg8[%c0_6, %c0_7, %c0_8] : memref<2x32x32xf32, #tpu.memory_space<vmem>>, vector<1x32x32xf32>
    %9 = vector.shape_cast %8 : vector<1x32x32xf32> to vector<32x32xf32>
    %c1 = arith.constant 1 : index
    %c0_9 = arith.constant 0 : index
    %c0_10 = arith.constant 0 : index
    %10 = vector.load %arg8[%c1, %c0_9, %c0_10] : memref<2x32x32xf32, #tpu.memory_space<vmem>>, vector<1x32x32xf32>
    %11 = vector.shape_cast %10 : vector<1x32x32xf32> to vector<32x32xf32>
    %c0_11 = arith.constant 0 : index
    %c0_12 = arith.constant 0 : index
    %c0_13 = arith.constant 0 : index
    %12 = vector.load %arg9[%c0_11, %c0_12, %c0_13] : memref<2x1x32xf32, #tpu.memory_space<vmem>>, vector<1x1x32xf32>
    %13 = vector.shape_cast %12 : vector<1x1x32xf32> to vector<1x32xf32>
    %14 = vector.shape_cast %13 : vector<1x32xf32> to vector<1x32xf32>
    %15 = vector.broadcast %14 : vector<1x32xf32> to vector<8x32xf32>
    %c1_14 = arith.constant 1 : index
    %c0_15 = arith.constant 0 : index
    %c0_16 = arith.constant 0 : index
    %16 = vector.load %arg9[%c1_14, %c0_15, %c0_16] : memref<2x1x32xf32, #tpu.memory_space<vmem>>, vector<1x1x32xf32>
    %17 = vector.shape_cast %16 : vector<1x1x32xf32> to vector<1x32xf32>
    %18 = vector.shape_cast %17 : vector<1x32xf32> to vector<1x32xf32>
    %19 = vector.broadcast %18 : vector<1x32xf32> to vector<8x32xf32>
    %c0_17 = arith.constant 0 : index
    %c0_18 = arith.constant 0 : index
    %20 = vector.load %arg10[%c0_17, %c0_18] : memref<32x112xf32, #tpu.memory_space<vmem>>, vector<32x112xf32>
    %c0_19 = arith.constant 0 : index
    %c0_20 = arith.constant 0 : index
    %21 = vector.load %arg11[%c0_19, %c0_20] : memref<1x112xf32, #tpu.memory_space<vmem>>, vector<1x112xf32>
    %22 = vector.shape_cast %21 : vector<1x112xf32> to vector<1x112xf32>
    %23 = vector.broadcast %22 : vector<1x112xf32> to vector<8x112xf32>
    %c0_21 = arith.constant 0 : index
    %c0_22 = arith.constant 0 : index
    %24 = vector.load %arg13[%c0_21, %c0_22] : memref<112x16xf32, #tpu.memory_space<vmem>>, vector<112x16xf32>
    %c0_23 = arith.constant 0 : index
    %c0_24 = arith.constant 0 : index
    %c0_25 = arith.constant 0 : index
    %25 = vector.load %arg3[%c0_23, %c0_24, %c0_25] : memref<1x8x7xf32, #tpu.memory_space<vmem>>, vector<1x8x7xf32>
    %26 = vector.shape_cast %25 : vector<1x8x7xf32> to vector<8x7xf32>
    %c0_26 = arith.constant 0 : index
    %c0_27 = arith.constant 0 : index
    %27 = vector.load %arg12[%c0_26, %c0_27] : memref<7x112xf32, #tpu.memory_space<vmem>>, vector<7x112xf32>
    %cst = arith.constant dense<0.000000e+00> : vector<8x112xf32>
    %28 = tpu.matmul %26, %27, %cst {dimension_numbers = #tpu.dot_dimension_numbers<[1], [0], [0], [1], [0, 0, 1, 1], [], []>} : vector<8x7xf32>, vector<7x112xf32>, vector<8x112xf32> -> vector<8x112xf32>
    %c0_28 = arith.constant 0 : index
    %c0_29 = arith.constant 0 : index
    %29 = vector.load %arg15[%c0_28, %c0_29] : memref<8x16xf32, #tpu.memory_space<vmem>>, vector<8x16xf32>
    %c0_30 = arith.constant 0 : index
    %c0_31 = arith.constant 0 : index
    %c0_32 = arith.constant 0 : index
    %30 = vector.load %arg4[%c0_30, %c0_31, %c0_32] : memref<10x8x1xf32, #tpu.memory_space<vmem>>, vector<1x8x1xf32>
    %31 = vector.shape_cast %30 : vector<1x8x1xf32> to vector<8x1xf32>
    %cst_33 = arith.constant dense<0.000000e+00> : vector<8x32xf32>
    %32 = tpu.matmul %29, %3, %cst_33 {dimension_numbers = #tpu.dot_dimension_numbers<[1], [0], [0], [1], [0, 0, 1, 1], [], []>} : vector<8x16xf32>, vector<16x32xf32>, vector<8x32xf32> -> vector<8x32xf32>
    %33 = vector.broadcast %31 : vector<8x1xf32> to vector<8x32xf32>
    %34 = vector.broadcast %4 : vector<1x32xf32> to vector<8x32xf32>
    %35 = arith.mulf %33, %34 : vector<8x32xf32>
    %36 = arith.addf %32, %35 : vector<8x32xf32>
    %37 = arith.addf %36, %7 : vector<8x32xf32>
    %cst_34 = arith.constant 0.000000e+00 : f32
    %38 = vector.broadcast %cst_34 : f32 to vector<8x32xf32>
    %39 = arith.maximumf %37, %38 : vector<8x32xf32>
    %cst_35 = arith.constant dense<0.000000e+00> : vector<8x32xf32>
    %40 = tpu.matmul %39, %9, %cst_35 {dimension_numbers = #tpu.dot_dimension_numbers<[1], [0], [0], [1], [0, 0, 1, 1], [], []>} : vector<8x32xf32>, vector<32x32xf32>, vector<8x32xf32> -> vector<8x32xf32>
    %41 = arith.addf %40, %15 : vector<8x32xf32>
    %cst_36 = arith.constant 0.000000e+00 : f32
    %42 = vector.broadcast %cst_36 : f32 to vector<8x32xf32>
    %43 = arith.maximumf %41, %42 : vector<8x32xf32>
    %cst_37 = arith.constant dense<0.000000e+00> : vector<8x32xf32>
    %44 = tpu.matmul %43, %11, %cst_37 {dimension_numbers = #tpu.dot_dimension_numbers<[1], [0], [0], [1], [0, 0, 1, 1], [], []>} : vector<8x32xf32>, vector<32x32xf32>, vector<8x32xf32> -> vector<8x32xf32>
    %45 = arith.addf %44, %19 : vector<8x32xf32>
    %46 = math.tanh %45 : vector<8x32xf32>
    %cst_38 = arith.constant dense<0.000000e+00> : vector<8x112xf32>
    %47 = tpu.matmul %46, %20, %cst_38 {dimension_numbers = #tpu.dot_dimension_numbers<[1], [0], [0], [1], [0, 0, 1, 1], [], []>} : vector<8x32xf32>, vector<32x112xf32>, vector<8x112xf32> -> vector<8x112xf32>
    %48 = arith.addf %47, %23 : vector<8x112xf32>
    %49 = arith.mulf %48, %28 : vector<8x112xf32>
    %cst_39 = arith.constant dense<0.000000e+00> : vector<8x16xf32>
    %50 = tpu.matmul %49, %24, %cst_39 {dimension_numbers = #tpu.dot_dimension_numbers<[1], [0], [0], [1], [0, 0, 1, 1], [], []>} : vector<8x112xf32>, vector<112x16xf32>, vector<8x16xf32> -> vector<8x16xf32>
    %51 = arith.addf %29, %50 : vector<8x16xf32>
    %c1_40 = arith.constant 1 : index
    %c0_41 = arith.constant 0 : index
    %c0_42 = arith.constant 0 : index
    %52 = vector.load %arg4[%c1_40, %c0_41, %c0_42] : memref<10x8x1xf32, #tpu.memory_space<vmem>>, vector<1x8x1xf32>
    %53 = vector.shape_cast %52 : vector<1x8x1xf32> to vector<8x1xf32>
    %cst_43 = arith.constant dense<0.000000e+00> : vector<8x32xf32>
    %54 = tpu.matmul %51, %3, %cst_43 {dimension_numbers = #tpu.dot_dimension_numbers<[1], [0], [0], [1], [0, 0, 1, 1], [], []>} : vector<8x16xf32>, vector<16x32xf32>, vector<8x32xf32> -> vector<8x32xf32>
    %55 = vector.broadcast %53 : vector<8x1xf32> to vector<8x32xf32>
    %56 = vector.broadcast %4 : vector<1x32xf32> to vector<8x32xf32>
    %57 = arith.mulf %55, %56 : vector<8x32xf32>
    %58 = arith.addf %54, %57 : vector<8x32xf32>
    %59 = arith.addf %58, %7 : vector<8x32xf32>
    %cst_44 = arith.constant 0.000000e+00 : f32
    %60 = vector.broadcast %cst_44 : f32 to vector<8x32xf32>
    %61 = arith.maximumf %59, %60 : vector<8x32xf32>
    %cst_45 = arith.constant dense<0.000000e+00> : vector<8x32xf32>
    %62 = tpu.matmul %61, %9, %cst_45 {dimension_numbers = #tpu.dot_dimension_numbers<[1], [0], [0], [1], [0, 0, 1, 1], [], []>} : vector<8x32xf32>, vector<32x32xf32>, vector<8x32xf32> -> vector<8x32xf32>
    %63 = arith.addf %62, %15 : vector<8x32xf32>
    %cst_46 = arith.constant 0.000000e+00 : f32
    %64 = vector.broadcast %cst_46 : f32 to vector<8x32xf32>
    %65 = arith.maximumf %63, %64 : vector<8x32xf32>
    %cst_47 = arith.constant dense<0.000000e+00> : vector<8x32xf32>
    %66 = tpu.matmul %65, %11, %cst_47 {dimension_numbers = #tpu.dot_dimension_numbers<[1], [0], [0], [1], [0, 0, 1, 1], [], []>} : vector<8x32xf32>, vector<32x32xf32>, vector<8x32xf32> -> vector<8x32xf32>
    %67 = arith.addf %66, %19 : vector<8x32xf32>
    %68 = math.tanh %67 : vector<8x32xf32>
    %cst_48 = arith.constant dense<0.000000e+00> : vector<8x112xf32>
    %69 = tpu.matmul %68, %20, %cst_48 {dimension_numbers = #tpu.dot_dimension_numbers<[1], [0], [0], [1], [0, 0, 1, 1], [], []>} : vector<8x32xf32>, vector<32x112xf32>, vector<8x112xf32> -> vector<8x112xf32>
    %70 = arith.addf %69, %23 : vector<8x112xf32>
    %71 = arith.mulf %70, %28 : vector<8x112xf32>
    %cst_49 = arith.constant dense<0.000000e+00> : vector<8x16xf32>
    %72 = tpu.matmul %71, %24, %cst_49 {dimension_numbers = #tpu.dot_dimension_numbers<[1], [0], [0], [1], [0, 0, 1, 1], [], []>} : vector<8x112xf32>, vector<112x16xf32>, vector<8x16xf32> -> vector<8x16xf32>
    %73 = arith.addf %51, %72 : vector<8x16xf32>
    %c2 = arith.constant 2 : index
    %c0_50 = arith.constant 0 : index
    %c0_51 = arith.constant 0 : index
    %74 = vector.load %arg4[%c2, %c0_50, %c0_51] : memref<10x8x1xf32, #tpu.memory_space<vmem>>, vector<1x8x1xf32>
    %75 = vector.shape_cast %74 : vector<1x8x1xf32> to vector<8x1xf32>
    %cst_52 = arith.constant dense<0.000000e+00> : vector<8x32xf32>
    %76 = tpu.matmul %73, %3, %cst_52 {dimension_numbers = #tpu.dot_dimension_numbers<[1], [0], [0], [1], [0, 0, 1, 1], [], []>} : vector<8x16xf32>, vector<16x32xf32>, vector<8x32xf32> -> vector<8x32xf32>
    %77 = vector.broadcast %75 : vector<8x1xf32> to vector<8x32xf32>
    %78 = vector.broadcast %4 : vector<1x32xf32> to vector<8x32xf32>
    %79 = arith.mulf %77, %78 : vector<8x32xf32>
    %80 = arith.addf %76, %79 : vector<8x32xf32>
    %81 = arith.addf %80, %7 : vector<8x32xf32>
    %cst_53 = arith.constant 0.000000e+00 : f32
    %82 = vector.broadcast %cst_53 : f32 to vector<8x32xf32>
    %83 = arith.maximumf %81, %82 : vector<8x32xf32>
    %cst_54 = arith.constant dense<0.000000e+00> : vector<8x32xf32>
    %84 = tpu.matmul %83, %9, %cst_54 {dimension_numbers = #tpu.dot_dimension_numbers<[1], [0], [0], [1], [0, 0, 1, 1], [], []>} : vector<8x32xf32>, vector<32x32xf32>, vector<8x32xf32> -> vector<8x32xf32>
    %85 = arith.addf %84, %15 : vector<8x32xf32>
    %cst_55 = arith.constant 0.000000e+00 : f32
    %86 = vector.broadcast %cst_55 : f32 to vector<8x32xf32>
    %87 = arith.maximumf %85, %86 : vector<8x32xf32>
    %cst_56 = arith.constant dense<0.000000e+00> : vector<8x32xf32>
    %88 = tpu.matmul %87, %11, %cst_56 {dimension_numbers = #tpu.dot_dimension_numbers<[1], [0], [0], [1], [0, 0, 1, 1], [], []>} : vector<8x32xf32>, vector<32x32xf32>, vector<8x32xf32> -> vector<8x32xf32>
    %89 = arith.addf %88, %19 : vector<8x32xf32>
    %90 = math.tanh %89 : vector<8x32xf32>
    %cst_57 = arith.constant dense<0.000000e+00> : vector<8x112xf32>
    %91 = tpu.matmul %90, %20, %cst_57 {dimension_numbers = #tpu.dot_dimension_numbers<[1], [0], [0], [1], [0, 0, 1, 1], [], []>} : vector<8x32xf32>, vector<32x112xf32>, vector<8x112xf32> -> vector<8x112xf32>
    %92 = arith.addf %91, %23 : vector<8x112xf32>
    %93 = arith.mulf %92, %28 : vector<8x112xf32>
    %cst_58 = arith.constant dense<0.000000e+00> : vector<8x16xf32>
    %94 = tpu.matmul %93, %24, %cst_58 {dimension_numbers = #tpu.dot_dimension_numbers<[1], [0], [0], [1], [0, 0, 1, 1], [], []>} : vector<8x112xf32>, vector<112x16xf32>, vector<8x16xf32> -> vector<8x16xf32>
    %95 = arith.addf %73, %94 : vector<8x16xf32>
    %c3 = arith.constant 3 : index
    %c0_59 = arith.constant 0 : index
    %c0_60 = arith.constant 0 : index
    %96 = vector.load %arg4[%c3, %c0_59, %c0_60] : memref<10x8x1xf32, #tpu.memory_space<vmem>>, vector<1x8x1xf32>
    %97 = vector.shape_cast %96 : vector<1x8x1xf32> to vector<8x1xf32>
    %cst_61 = arith.constant dense<0.000000e+00> : vector<8x32xf32>
    %98 = tpu.matmul %95, %3, %cst_61 {dimension_numbers = #tpu.dot_dimension_numbers<[1], [0], [0], [1], [0, 0, 1, 1], [], []>} : vector<8x16xf32>, vector<16x32xf32>, vector<8x32xf32> -> vector<8x32xf32>
    %99 = vector.broadcast %97 : vector<8x1xf32> to vector<8x32xf32>
    %100 = vector.broadcast %4 : vector<1x32xf32> to vector<8x32xf32>
    %101 = arith.mulf %99, %100 : vector<8x32xf32>
    %102 = arith.addf %98, %101 : vector<8x32xf32>
    %103 = arith.addf %102, %7 : vector<8x32xf32>
    %cst_62 = arith.constant 0.000000e+00 : f32
    %104 = vector.broadcast %cst_62 : f32 to vector<8x32xf32>
    %105 = arith.maximumf %103, %104 : vector<8x32xf32>
    %cst_63 = arith.constant dense<0.000000e+00> : vector<8x32xf32>
    %106 = tpu.matmul %105, %9, %cst_63 {dimension_numbers = #tpu.dot_dimension_numbers<[1], [0], [0], [1], [0, 0, 1, 1], [], []>} : vector<8x32xf32>, vector<32x32xf32>, vector<8x32xf32> -> vector<8x32xf32>
    %107 = arith.addf %106, %15 : vector<8x32xf32>
    %cst_64 = arith.constant 0.000000e+00 : f32
    %108 = vector.broadcast %cst_64 : f32 to vector<8x32xf32>
    %109 = arith.maximumf %107, %108 : vector<8x32xf32>
    %cst_65 = arith.constant dense<0.000000e+00> : vector<8x32xf32>
    %110 = tpu.matmul %109, %11, %cst_65 {dimension_numbers = #tpu.dot_dimension_numbers<[1], [0], [0], [1], [0, 0, 1, 1], [], []>} : vector<8x32xf32>, vector<32x32xf32>, vector<8x32xf32> -> vector<8x32xf32>
    %111 = arith.addf %110, %19 : vector<8x32xf32>
    %112 = math.tanh %111 : vector<8x32xf32>
    %cst_66 = arith.constant dense<0.000000e+00> : vector<8x112xf32>
    %113 = tpu.matmul %112, %20, %cst_66 {dimension_numbers = #tpu.dot_dimension_numbers<[1], [0], [0], [1], [0, 0, 1, 1], [], []>} : vector<8x32xf32>, vector<32x112xf32>, vector<8x112xf32> -> vector<8x112xf32>
    %114 = arith.addf %113, %23 : vector<8x112xf32>
    %115 = arith.mulf %114, %28 : vector<8x112xf32>
    %cst_67 = arith.constant dense<0.000000e+00> : vector<8x16xf32>
    %116 = tpu.matmul %115, %24, %cst_67 {dimension_numbers = #tpu.dot_dimension_numbers<[1], [0], [0], [1], [0, 0, 1, 1], [], []>} : vector<8x112xf32>, vector<112x16xf32>, vector<8x16xf32> -> vector<8x16xf32>
    %117 = arith.addf %95, %116 : vector<8x16xf32>
    %c4 = arith.constant 4 : index
    %c0_68 = arith.constant 0 : index
    %c0_69 = arith.constant 0 : index
    %118 = vector.load %arg4[%c4, %c0_68, %c0_69] : memref<10x8x1xf32, #tpu.memory_space<vmem>>, vector<1x8x1xf32>
    %119 = vector.shape_cast %118 : vector<1x8x1xf32> to vector<8x1xf32>
    %cst_70 = arith.constant dense<0.000000e+00> : vector<8x32xf32>
    %120 = tpu.matmul %117, %3, %cst_70 {dimension_numbers = #tpu.dot_dimension_numbers<[1], [0], [0], [1], [0, 0, 1, 1], [], []>} : vector<8x16xf32>, vector<16x32xf32>, vector<8x32xf32> -> vector<8x32xf32>
    %121 = vector.broadcast %119 : vector<8x1xf32> to vector<8x32xf32>
    %122 = vector.broadcast %4 : vector<1x32xf32> to vector<8x32xf32>
    %123 = arith.mulf %121, %122 : vector<8x32xf32>
    %124 = arith.addf %120, %123 : vector<8x32xf32>
    %125 = arith.addf %124, %7 : vector<8x32xf32>
    %cst_71 = arith.constant 0.000000e+00 : f32
    %126 = vector.broadcast %cst_71 : f32 to vector<8x32xf32>
    %127 = arith.maximumf %125, %126 : vector<8x32xf32>
    %cst_72 = arith.constant dense<0.000000e+00> : vector<8x32xf32>
    %128 = tpu.matmul %127, %9, %cst_72 {dimension_numbers = #tpu.dot_dimension_numbers<[1], [0], [0], [1], [0, 0, 1, 1], [], []>} : vector<8x32xf32>, vector<32x32xf32>, vector<8x32xf32> -> vector<8x32xf32>
    %129 = arith.addf %128, %15 : vector<8x32xf32>
    %cst_73 = arith.constant 0.000000e+00 : f32
    %130 = vector.broadcast %cst_73 : f32 to vector<8x32xf32>
    %131 = arith.maximumf %129, %130 : vector<8x32xf32>
    %cst_74 = arith.constant dense<0.000000e+00> : vector<8x32xf32>
    %132 = tpu.matmul %131, %11, %cst_74 {dimension_numbers = #tpu.dot_dimension_numbers<[1], [0], [0], [1], [0, 0, 1, 1], [], []>} : vector<8x32xf32>, vector<32x32xf32>, vector<8x32xf32> -> vector<8x32xf32>
    %133 = arith.addf %132, %19 : vector<8x32xf32>
    %134 = math.tanh %133 : vector<8x32xf32>
    %cst_75 = arith.constant dense<0.000000e+00> : vector<8x112xf32>
    %135 = tpu.matmul %134, %20, %cst_75 {dimension_numbers = #tpu.dot_dimension_numbers<[1], [0], [0], [1], [0, 0, 1, 1], [], []>} : vector<8x32xf32>, vector<32x112xf32>, vector<8x112xf32> -> vector<8x112xf32>
    %136 = arith.addf %135, %23 : vector<8x112xf32>
    %137 = arith.mulf %136, %28 : vector<8x112xf32>
    %cst_76 = arith.constant dense<0.000000e+00> : vector<8x16xf32>
    %138 = tpu.matmul %137, %24, %cst_76 {dimension_numbers = #tpu.dot_dimension_numbers<[1], [0], [0], [1], [0, 0, 1, 1], [], []>} : vector<8x112xf32>, vector<112x16xf32>, vector<8x16xf32> -> vector<8x16xf32>
    %139 = arith.addf %117, %138 : vector<8x16xf32>
    %c5 = arith.constant 5 : index
    %c0_77 = arith.constant 0 : index
    %c0_78 = arith.constant 0 : index
    %140 = vector.load %arg4[%c5, %c0_77, %c0_78] : memref<10x8x1xf32, #tpu.memory_space<vmem>>, vector<1x8x1xf32>
    %141 = vector.shape_cast %140 : vector<1x8x1xf32> to vector<8x1xf32>
    %cst_79 = arith.constant dense<0.000000e+00> : vector<8x32xf32>
    %142 = tpu.matmul %139, %3, %cst_79 {dimension_numbers = #tpu.dot_dimension_numbers<[1], [0], [0], [1], [0, 0, 1, 1], [], []>} : vector<8x16xf32>, vector<16x32xf32>, vector<8x32xf32> -> vector<8x32xf32>
    %143 = vector.broadcast %141 : vector<8x1xf32> to vector<8x32xf32>
    %144 = vector.broadcast %4 : vector<1x32xf32> to vector<8x32xf32>
    %145 = arith.mulf %143, %144 : vector<8x32xf32>
    %146 = arith.addf %142, %145 : vector<8x32xf32>
    %147 = arith.addf %146, %7 : vector<8x32xf32>
    %cst_80 = arith.constant 0.000000e+00 : f32
    %148 = vector.broadcast %cst_80 : f32 to vector<8x32xf32>
    %149 = arith.maximumf %147, %148 : vector<8x32xf32>
    %cst_81 = arith.constant dense<0.000000e+00> : vector<8x32xf32>
    %150 = tpu.matmul %149, %9, %cst_81 {dimension_numbers = #tpu.dot_dimension_numbers<[1], [0], [0], [1], [0, 0, 1, 1], [], []>} : vector<8x32xf32>, vector<32x32xf32>, vector<8x32xf32> -> vector<8x32xf32>
    %151 = arith.addf %150, %15 : vector<8x32xf32>
    %cst_82 = arith.constant 0.000000e+00 : f32
    %152 = vector.broadcast %cst_82 : f32 to vector<8x32xf32>
    %153 = arith.maximumf %151, %152 : vector<8x32xf32>
    %cst_83 = arith.constant dense<0.000000e+00> : vector<8x32xf32>
    %154 = tpu.matmul %153, %11, %cst_83 {dimension_numbers = #tpu.dot_dimension_numbers<[1], [0], [0], [1], [0, 0, 1, 1], [], []>} : vector<8x32xf32>, vector<32x32xf32>, vector<8x32xf32> -> vector<8x32xf32>
    %155 = arith.addf %154, %19 : vector<8x32xf32>
    %156 = math.tanh %155 : vector<8x32xf32>
    %cst_84 = arith.constant dense<0.000000e+00> : vector<8x112xf32>
    %157 = tpu.matmul %156, %20, %cst_84 {dimension_numbers = #tpu.dot_dimension_numbers<[1], [0], [0], [1], [0, 0, 1, 1], [], []>} : vector<8x32xf32>, vector<32x112xf32>, vector<8x112xf32> -> vector<8x112xf32>
    %158 = arith.addf %157, %23 : vector<8x112xf32>
    %159 = arith.mulf %158, %28 : vector<8x112xf32>
    %cst_85 = arith.constant dense<0.000000e+00> : vector<8x16xf32>
    %160 = tpu.matmul %159, %24, %cst_85 {dimension_numbers = #tpu.dot_dimension_numbers<[1], [0], [0], [1], [0, 0, 1, 1], [], []>} : vector<8x112xf32>, vector<112x16xf32>, vector<8x16xf32> -> vector<8x16xf32>
    %161 = arith.addf %139, %160 : vector<8x16xf32>
    %c6 = arith.constant 6 : index
    %c0_86 = arith.constant 0 : index
    %c0_87 = arith.constant 0 : index
    %162 = vector.load %arg4[%c6, %c0_86, %c0_87] : memref<10x8x1xf32, #tpu.memory_space<vmem>>, vector<1x8x1xf32>
    %163 = vector.shape_cast %162 : vector<1x8x1xf32> to vector<8x1xf32>
    %cst_88 = arith.constant dense<0.000000e+00> : vector<8x32xf32>
    %164 = tpu.matmul %161, %3, %cst_88 {dimension_numbers = #tpu.dot_dimension_numbers<[1], [0], [0], [1], [0, 0, 1, 1], [], []>} : vector<8x16xf32>, vector<16x32xf32>, vector<8x32xf32> -> vector<8x32xf32>
    %165 = vector.broadcast %163 : vector<8x1xf32> to vector<8x32xf32>
    %166 = vector.broadcast %4 : vector<1x32xf32> to vector<8x32xf32>
    %167 = arith.mulf %165, %166 : vector<8x32xf32>
    %168 = arith.addf %164, %167 : vector<8x32xf32>
    %169 = arith.addf %168, %7 : vector<8x32xf32>
    %cst_89 = arith.constant 0.000000e+00 : f32
    %170 = vector.broadcast %cst_89 : f32 to vector<8x32xf32>
    %171 = arith.maximumf %169, %170 : vector<8x32xf32>
    %cst_90 = arith.constant dense<0.000000e+00> : vector<8x32xf32>
    %172 = tpu.matmul %171, %9, %cst_90 {dimension_numbers = #tpu.dot_dimension_numbers<[1], [0], [0], [1], [0, 0, 1, 1], [], []>} : vector<8x32xf32>, vector<32x32xf32>, vector<8x32xf32> -> vector<8x32xf32>
    %173 = arith.addf %172, %15 : vector<8x32xf32>
    %cst_91 = arith.constant 0.000000e+00 : f32
    %174 = vector.broadcast %cst_91 : f32 to vector<8x32xf32>
    %175 = arith.maximumf %173, %174 : vector<8x32xf32>
    %cst_92 = arith.constant dense<0.000000e+00> : vector<8x32xf32>
    %176 = tpu.matmul %175, %11, %cst_92 {dimension_numbers = #tpu.dot_dimension_numbers<[1], [0], [0], [1], [0, 0, 1, 1], [], []>} : vector<8x32xf32>, vector<32x32xf32>, vector<8x32xf32> -> vector<8x32xf32>
    %177 = arith.addf %176, %19 : vector<8x32xf32>
    %178 = math.tanh %177 : vector<8x32xf32>
    %cst_93 = arith.constant dense<0.000000e+00> : vector<8x112xf32>
    %179 = tpu.matmul %178, %20, %cst_93 {dimension_numbers = #tpu.dot_dimension_numbers<[1], [0], [0], [1], [0, 0, 1, 1], [], []>} : vector<8x32xf32>, vector<32x112xf32>, vector<8x112xf32> -> vector<8x112xf32>
    %180 = arith.addf %179, %23 : vector<8x112xf32>
    %181 = arith.mulf %180, %28 : vector<8x112xf32>
    %cst_94 = arith.constant dense<0.000000e+00> : vector<8x16xf32>
    %182 = tpu.matmul %181, %24, %cst_94 {dimension_numbers = #tpu.dot_dimension_numbers<[1], [0], [0], [1], [0, 0, 1, 1], [], []>} : vector<8x112xf32>, vector<112x16xf32>, vector<8x16xf32> -> vector<8x16xf32>
    %183 = arith.addf %161, %182 : vector<8x16xf32>
    %c7 = arith.constant 7 : index
    %c0_95 = arith.constant 0 : index
    %c0_96 = arith.constant 0 : index
    %184 = vector.load %arg4[%c7, %c0_95, %c0_96] : memref<10x8x1xf32, #tpu.memory_space<vmem>>, vector<1x8x1xf32>
    %185 = vector.shape_cast %184 : vector<1x8x1xf32> to vector<8x1xf32>
    %cst_97 = arith.constant dense<0.000000e+00> : vector<8x32xf32>
    %186 = tpu.matmul %183, %3, %cst_97 {dimension_numbers = #tpu.dot_dimension_numbers<[1], [0], [0], [1], [0, 0, 1, 1], [], []>} : vector<8x16xf32>, vector<16x32xf32>, vector<8x32xf32> -> vector<8x32xf32>
    %187 = vector.broadcast %185 : vector<8x1xf32> to vector<8x32xf32>
    %188 = vector.broadcast %4 : vector<1x32xf32> to vector<8x32xf32>
    %189 = arith.mulf %187, %188 : vector<8x32xf32>
    %190 = arith.addf %186, %189 : vector<8x32xf32>
    %191 = arith.addf %190, %7 : vector<8x32xf32>
    %cst_98 = arith.constant 0.000000e+00 : f32
    %192 = vector.broadcast %cst_98 : f32 to vector<8x32xf32>
    %193 = arith.maximumf %191, %192 : vector<8x32xf32>
    %cst_99 = arith.constant dense<0.000000e+00> : vector<8x32xf32>
    %194 = tpu.matmul %193, %9, %cst_99 {dimension_numbers = #tpu.dot_dimension_numbers<[1], [0], [0], [1], [0, 0, 1, 1], [], []>} : vector<8x32xf32>, vector<32x32xf32>, vector<8x32xf32> -> vector<8x32xf32>
    %195 = arith.addf %194, %15 : vector<8x32xf32>
    %cst_100 = arith.constant 0.000000e+00 : f32
    %196 = vector.broadcast %cst_100 : f32 to vector<8x32xf32>
    %197 = arith.maximumf %195, %196 : vector<8x32xf32>
    %cst_101 = arith.constant dense<0.000000e+00> : vector<8x32xf32>
    %198 = tpu.matmul %197, %11, %cst_101 {dimension_numbers = #tpu.dot_dimension_numbers<[1], [0], [0], [1], [0, 0, 1, 1], [], []>} : vector<8x32xf32>, vector<32x32xf32>, vector<8x32xf32> -> vector<8x32xf32>
    %199 = arith.addf %198, %19 : vector<8x32xf32>
    %200 = math.tanh %199 : vector<8x32xf32>
    %cst_102 = arith.constant dense<0.000000e+00> : vector<8x112xf32>
    %201 = tpu.matmul %200, %20, %cst_102 {dimension_numbers = #tpu.dot_dimension_numbers<[1], [0], [0], [1], [0, 0, 1, 1], [], []>} : vector<8x32xf32>, vector<32x112xf32>, vector<8x112xf32> -> vector<8x112xf32>
    %202 = arith.addf %201, %23 : vector<8x112xf32>
    %203 = arith.mulf %202, %28 : vector<8x112xf32>
    %cst_103 = arith.constant dense<0.000000e+00> : vector<8x16xf32>
    %204 = tpu.matmul %203, %24, %cst_103 {dimension_numbers = #tpu.dot_dimension_numbers<[1], [0], [0], [1], [0, 0, 1, 1], [], []>} : vector<8x112xf32>, vector<112x16xf32>, vector<8x16xf32> -> vector<8x16xf32>
    %205 = arith.addf %183, %204 : vector<8x16xf32>
    %c8 = arith.constant 8 : index
    %c0_104 = arith.constant 0 : index
    %c0_105 = arith.constant 0 : index
    %206 = vector.load %arg4[%c8, %c0_104, %c0_105] : memref<10x8x1xf32, #tpu.memory_space<vmem>>, vector<1x8x1xf32>
    %207 = vector.shape_cast %206 : vector<1x8x1xf32> to vector<8x1xf32>
    %cst_106 = arith.constant dense<0.000000e+00> : vector<8x32xf32>
    %208 = tpu.matmul %205, %3, %cst_106 {dimension_numbers = #tpu.dot_dimension_numbers<[1], [0], [0], [1], [0, 0, 1, 1], [], []>} : vector<8x16xf32>, vector<16x32xf32>, vector<8x32xf32> -> vector<8x32xf32>
    %209 = vector.broadcast %207 : vector<8x1xf32> to vector<8x32xf32>
    %210 = vector.broadcast %4 : vector<1x32xf32> to vector<8x32xf32>
    %211 = arith.mulf %209, %210 : vector<8x32xf32>
    %212 = arith.addf %208, %211 : vector<8x32xf32>
    %213 = arith.addf %212, %7 : vector<8x32xf32>
    %cst_107 = arith.constant 0.000000e+00 : f32
    %214 = vector.broadcast %cst_107 : f32 to vector<8x32xf32>
    %215 = arith.maximumf %213, %214 : vector<8x32xf32>
    %cst_108 = arith.constant dense<0.000000e+00> : vector<8x32xf32>
    %216 = tpu.matmul %215, %9, %cst_108 {dimension_numbers = #tpu.dot_dimension_numbers<[1], [0], [0], [1], [0, 0, 1, 1], [], []>} : vector<8x32xf32>, vector<32x32xf32>, vector<8x32xf32> -> vector<8x32xf32>
    %217 = arith.addf %216, %15 : vector<8x32xf32>
    %cst_109 = arith.constant 0.000000e+00 : f32
    %218 = vector.broadcast %cst_109 : f32 to vector<8x32xf32>
    %219 = arith.maximumf %217, %218 : vector<8x32xf32>
    %cst_110 = arith.constant dense<0.000000e+00> : vector<8x32xf32>
    %220 = tpu.matmul %219, %11, %cst_110 {dimension_numbers = #tpu.dot_dimension_numbers<[1], [0], [0], [1], [0, 0, 1, 1], [], []>} : vector<8x32xf32>, vector<32x32xf32>, vector<8x32xf32> -> vector<8x32xf32>
    %221 = arith.addf %220, %19 : vector<8x32xf32>
    %222 = math.tanh %221 : vector<8x32xf32>
    %cst_111 = arith.constant dense<0.000000e+00> : vector<8x112xf32>
    %223 = tpu.matmul %222, %20, %cst_111 {dimension_numbers = #tpu.dot_dimension_numbers<[1], [0], [0], [1], [0, 0, 1, 1], [], []>} : vector<8x32xf32>, vector<32x112xf32>, vector<8x112xf32> -> vector<8x112xf32>
    %224 = arith.addf %223, %23 : vector<8x112xf32>
    %225 = arith.mulf %224, %28 : vector<8x112xf32>
    %cst_112 = arith.constant dense<0.000000e+00> : vector<8x16xf32>
    %226 = tpu.matmul %225, %24, %cst_112 {dimension_numbers = #tpu.dot_dimension_numbers<[1], [0], [0], [1], [0, 0, 1, 1], [], []>} : vector<8x112xf32>, vector<112x16xf32>, vector<8x16xf32> -> vector<8x16xf32>
    %227 = arith.addf %205, %226 : vector<8x16xf32>
    %c9 = arith.constant 9 : index
    %c0_113 = arith.constant 0 : index
    %c0_114 = arith.constant 0 : index
    %228 = vector.load %arg4[%c9, %c0_113, %c0_114] : memref<10x8x1xf32, #tpu.memory_space<vmem>>, vector<1x8x1xf32>
    %229 = vector.shape_cast %228 : vector<1x8x1xf32> to vector<8x1xf32>
    %cst_115 = arith.constant dense<0.000000e+00> : vector<8x32xf32>
    %230 = tpu.matmul %227, %3, %cst_115 {dimension_numbers = #tpu.dot_dimension_numbers<[1], [0], [0], [1], [0, 0, 1, 1], [], []>} : vector<8x16xf32>, vector<16x32xf32>, vector<8x32xf32> -> vector<8x32xf32>
    %231 = vector.broadcast %229 : vector<8x1xf32> to vector<8x32xf32>
    %232 = vector.broadcast %4 : vector<1x32xf32> to vector<8x32xf32>
    %233 = arith.mulf %231, %232 : vector<8x32xf32>
    %234 = arith.addf %230, %233 : vector<8x32xf32>
    %235 = arith.addf %234, %7 : vector<8x32xf32>
    %cst_116 = arith.constant 0.000000e+00 : f32
    %236 = vector.broadcast %cst_116 : f32 to vector<8x32xf32>
    %237 = arith.maximumf %235, %236 : vector<8x32xf32>
    %cst_117 = arith.constant dense<0.000000e+00> : vector<8x32xf32>
    %238 = tpu.matmul %237, %9, %cst_117 {dimension_numbers = #tpu.dot_dimension_numbers<[1], [0], [0], [1], [0, 0, 1, 1], [], []>} : vector<8x32xf32>, vector<32x32xf32>, vector<8x32xf32> -> vector<8x32xf32>
    %239 = arith.addf %238, %15 : vector<8x32xf32>
    %cst_118 = arith.constant 0.000000e+00 : f32
    %240 = vector.broadcast %cst_118 : f32 to vector<8x32xf32>
    %241 = arith.maximumf %239, %240 : vector<8x32xf32>
    %cst_119 = arith.constant dense<0.000000e+00> : vector<8x32xf32>
    %242 = tpu.matmul %241, %11, %cst_119 {dimension_numbers = #tpu.dot_dimension_numbers<[1], [0], [0], [1], [0, 0, 1, 1], [], []>} : vector<8x32xf32>, vector<32x32xf32>, vector<8x32xf32> -> vector<8x32xf32>
    %243 = arith.addf %242, %19 : vector<8x32xf32>
    %244 = math.tanh %243 : vector<8x32xf32>
    %cst_120 = arith.constant dense<0.000000e+00> : vector<8x112xf32>
    %245 = tpu.matmul %244, %20, %cst_120 {dimension_numbers = #tpu.dot_dimension_numbers<[1], [0], [0], [1], [0, 0, 1, 1], [], []>} : vector<8x32xf32>, vector<32x112xf32>, vector<8x112xf32> -> vector<8x112xf32>
    %246 = arith.addf %245, %23 : vector<8x112xf32>
    %247 = arith.mulf %246, %28 : vector<8x112xf32>
    %cst_121 = arith.constant dense<0.000000e+00> : vector<8x16xf32>
    %248 = tpu.matmul %247, %24, %cst_121 {dimension_numbers = #tpu.dot_dimension_numbers<[1], [0], [0], [1], [0, 0, 1, 1], [], []>} : vector<8x112xf32>, vector<112x16xf32>, vector<8x16xf32> -> vector<8x16xf32>
    %249 = arith.addf %227, %248 : vector<8x16xf32>
    %c0_122 = arith.constant 0 : index
    %c0_123 = arith.constant 0 : index
    %250 = vector.load %arg15[%c0_122, %c0_123] : memref<8x16xf32, #tpu.memory_space<vmem>>, vector<8x16xf32>
    tpu.vector_store %arg15[%c0_122, %c0_123], %249 {strides = array<i32>} : memref<8x16xf32, #tpu.memory_space<vmem>>, vector<8x16xf32>,
    %c0_124 = arith.constant 0 : index
    %c0_125 = arith.constant 0 : index
    %c0_126 = arith.constant 0 : index
    %251 = vector.load %arg14[%c0_124, %c0_125, %c0_126] : memref<1x8x16xf32, #tpu.memory_space<vmem>>, vector<1x8x16xf32>
    %252 = vector.shape_cast %251 : vector<1x8x16xf32> to vector<8x16xf32>
    %253 = vector.shape_cast %249 : vector<8x16xf32> to vector<1x8x16xf32>
    tpu.vector_store %arg14[%c0_124, %c0_125, %c0_126], %253 {strides = array<i32>} : memref<1x8x16xf32, #tpu.memory_space<vmem>>, vector<1x8x16xf32>,
    return
  }
  func.func @transform_0(%arg0: i32, %arg1: i32) -> (i32, i32) {
    %c0_i32 = arith.constant 0 : i32
    %c0_i32_0 = arith.constant 0 : i32
    return %arg0, %c0_i32 : i32, i32
  }
  func.func @transform_1(%arg0: i32, %arg1: i32) -> (i32, i32, i32) {
    %c0_i32 = arith.constant 0 : i32
    %c0_i32_0 = arith.constant 0 : i32
    return %arg1, %arg0, %c0_i32 : i32, i32, i32
  }
  func.func @transform_2(%arg0: i32, %arg1: i32) -> (i32, i32, i32) {
    %c0_i32 = arith.constant 0 : i32
    %c0_i32_0 = arith.constant 0 : i32
    return %arg1, %arg0, %c0_i32 : i32, i32, i32
  }
  func.func @transform_3(%arg0: i32, %arg1: i32) -> (i32, i32) {
    %c0_i32 = arith.constant 0 : i32
    %c0_i32_0 = arith.constant 0 : i32
    %c0_i32_1 = arith.constant 0 : i32
    return %c0_i32, %c0_i32_0 : i32, i32
  }
  func.func @transform_4(%arg0: i32, %arg1: i32) -> (i32, i32) {
    %c0_i32 = arith.constant 0 : i32
    %c0_i32_0 = arith.constant 0 : i32
    %c0_i32_1 = arith.constant 0 : i32
    return %c0_i32, %c0_i32_0 : i32, i32
  }
  func.func @transform_5(%arg0: i32, %arg1: i32) -> (i32, i32) {
    %c0_i32 = arith.constant 0 : i32
    %c0_i32_0 = arith.constant 0 : i32
    %c0_i32_1 = arith.constant 0 : i32
    return %c0_i32, %c0_i32_0 : i32, i32
  }
  func.func @transform_6(%arg0: i32, %arg1: i32) -> (i32, i32, i32) {
    %c0_i32 = arith.constant 0 : i32
    %c0_i32_0 = arith.constant 0 : i32
    %c0_i32_1 = arith.constant 0 : i32
    %c0_i32_2 = arith.constant 0 : i32
    return %c0_i32, %c0_i32_0, %c0_i32_1 : i32, i32, i32
  }
  func.func @transform_7(%arg0: i32, %arg1: i32) -> (i32, i32, i32) {
    %c0_i32 = arith.constant 0 : i32
    %c0_i32_0 = arith.constant 0 : i32
    %c0_i32_1 = arith.constant 0 : i32
    %c0_i32_2 = arith.constant 0 : i32
    return %c0_i32, %c0_i32_0, %c0_i32_1 : i32, i32, i32
  }
  func.func @transform_8(%arg0: i32, %arg1: i32) -> (i32, i32) {
    %c0_i32 = arith.constant 0 : i32
    %c0_i32_0 = arith.constant 0 : i32
    %c0_i32_1 = arith.constant 0 : i32
    return %c0_i32, %c0_i32_0 : i32, i32
  }
  func.func @transform_9(%arg0: i32, %arg1: i32) -> (i32, i32) {
    %c0_i32 = arith.constant 0 : i32
    %c0_i32_0 = arith.constant 0 : i32
    %c0_i32_1 = arith.constant 0 : i32
    return %c0_i32, %c0_i32_0 : i32, i32
  }
  func.func @transform_10(%arg0: i32, %arg1: i32) -> (i32, i32) {
    %c0_i32 = arith.constant 0 : i32
    %c0_i32_0 = arith.constant 0 : i32
    %c0_i32_1 = arith.constant 0 : i32
    return %c0_i32, %c0_i32_0 : i32, i32
  }
  func.func @transform_11(%arg0: i32, %arg1: i32) -> (i32, i32) {
    %c0_i32 = arith.constant 0 : i32
    %c0_i32_0 = arith.constant 0 : i32
    %c0_i32_1 = arith.constant 0 : i32
    return %c0_i32, %c0_i32_0 : i32, i32
  }
  func.func @transform_12(%arg0: i32, %arg1: i32) -> (i32, i32, i32) {
    %c0_i32 = arith.constant 0 : i32
    %c0_i32_0 = arith.constant 0 : i32
    return %arg1, %arg0, %c0_i32 : i32, i32, i32
  }
}

</mosaic_0001>

<bundles_post_ra>
// kernel: tpu_custom_call.1
= control target key start
LH: loop header
LB: loop body
LE: loop exit
PB: predicated region body
PF: predicated region fallthrough
CT: control target
= control target key end

     0   :  { %17 = vsyncpa [#allocation4], 0  ;;  %s7138_s0 = inlined_call_operand.vmem [shape: f32[8,16], index: 0, kind: input, shape index: {}]   ;;  %s7139_s1 = inlined_call_operand.vmem [shape: f32[4,8,7], index: 1, kind: input, shape index: {}]   ;;  %s7140_s2 = inlined_call_operand.vmem [shape: f32[40,8,1], index: 2, kind: input, shape index: {}]   ;;  %s7141_s3 = inlined_call_operand.vmem [shape: f32[16,32], index: 3, kind: input, shape index: {}]   ;;  %s7142_s4 = inlined_call_operand.vmem [shape: f32[1,32], index: 4, kind: input, shape index: {}]   ;;  %s7143_s5 = inlined_call_operand.vmem [shape: f32[1,32], index: 5, kind: input, shape index: {}]   ;;  %s7144_s6 = inlined_call_operand.vmem [shape: f32[2,32,32], index: 6, kind: input, shape index: {}]   ;;  %s7145_s7 = inlined_call_operand.vmem [shape: f32[2,1,32], index: 7, kind: input, shape index: {}]   ;;  %s7146_s8 = inlined_call_operand.vmem [shape: f32[32,112], index: 8, kind: input, shape index: {}]   ;;  %s7147_s9 = inlined_call_operand.vmem [shape: f32[1,112], index: 9, kind: input, shape index: {}]   ;;  %s7148_s10 = inlined_call_operand.vmem [shape: f32[7,112], index: 10, kind: input, shape index: {}]   ;;  %s7149_s11 = inlined_call_operand.vmem [shape: f32[112,16], index: 11, kind: input, shape index: {}]   ;;  %s7150_s12 = inlined_call_operand.hbm [shape: f32[4,8,16], index: 12, kind: output, shape index: {}]  }
   0x1   :  { %19 = vsyncpa [#allocation4 + $0x1], 0  ;;  %s6335_s21 = smov 0   ;;  %s6337_s22 = smov 0  }
   0x2   :  { %s6339_s23 = smov 0   ;;  %s6341_s24 = smov 0  }
   0x3   :  { %s6343_s25 = smov 0   ;;  %s6345_s26 = smov 0  }
   0x4 LB: > { %7157 = sst [smem:[#allocation6_spill]] %s6243_s21  ;;  %s4547_s27 = sadd.s32 4294967295, %s6263_s26   ;;  %s6263_s26 = sphi %s6345_s26, %s25_s26   ;;  %s6259_s25 = sphi %s6343_s25, %s7171_s25   ;;  %s6255_s24 = sphi %s6341_s24, %s7170_s24   ;;  %s6251_s23 = sphi %s6339_s23, %s7169_s23   ;;  %s6247_s22 = sphi %s6337_s22, %s7173_s22   ;;  %s6243_s21 = sphi %s6335_s21, %s7172_s21  }
   0x5   : > { %7158 = sst [smem:[#allocation7_spill]] %s6251_s23  ;;  %s4548_s28 = sadd.s32 4294967294, %s6263_s26  }
   0x6   : > { %7159 = sst [smem:[#allocation8_spill]] %s6259_s25  ;;  %s34_s29 = sadd.s32 1, %s6259_s25 }
   0x7   : > { %s317_s30 = sadd.s32 1, %s6251_s23  ;;  %p35_p0 = scmp.ge.s32.totalorder %s34_s29, 4 }
   0x8   : > { %p327_p1 = scmp.ne.s32.totalorder %s6251_s23, %s6247_s22  ;;  %p328_p2 = scmp.eq.s32.totalorder %s4547_s27, 3 }
   0x9   : > { %p333_p3 = scmp.ne.s32.totalorder %s6247_s22, %s6243_s21  ;;  %s7175_s29 = smov (%p35_p0, %s34_s29), 0 }
   0xa   : > { %7160 = sst [smem:[#allocation9_spill]] %s7175_s29  ;;  %p6375_p4 = por %p328_p2, %p327_p1 }
   0xb   : > { %p334_p5 = scmp.eq.s32.totalorder %s4548_s28, 3  ;;  %s312_s14 = ssub.s32 %s6259_s25, %s7175_s29 }
   0xc   : > { %p4552_p6 = scmp.ge.s32.totalorder %s6263_s26, 1  ;;  %p315_p7 = scmp.eq.s32.totalorder %s312_s14, 0 }
   0xd   : > { %p6382_p8 = por %p334_p5, %p333_p3  ;;  %p408_p9 = scmp.lt.s32.totalorder %s6263_s26, 5 }
   0xe   : > { %s6388_s16 = scalar_select %p315_p7, %s6251_s23, %s317_s30  }
   0xf   : > { %s7162_s15 = scalar_select %p6382_p8, 1, 0 }
  0x10   : > { %7164 = sst [smem:[#allocation11_spill]] %s6388_s16  ;;  %p409_p10 = pnand %p4552_p6, %p408_p9 }
  0x11   : > { %7163 = sst [smem:[#allocation10_spill]] %s7162_s15  ;;  %s7155_s17 = sand.u32 (!%p409_p10), 1, %s6247_s22  }
  0x12   : > { %412 = sbr.rel (%p409_p10) target bundleno = 10945 (0x2ac1), region = 68  ;;  %p468_p11 = scmp.lt.s32.totalorder (!%p409_p10), %s6255_s24, 3 }
  0x13   : > { %s6394_s18 = sshll.u32 (!%p409_p10), %s7155_s17, 3  ;;  %s475_s19 = smul.u32 (!%p409_p10), 10, %s6255_s24 }
  0x14   : > { %s463_s15 = scalar_lea.vmem (!%p409_p10), [#allocation3], %s6394_s18  ;;  %p4556_p13 = scmp.ne.s32.totalorder (!%p409_p10), %s6255_s24, 0 }
  0x15   : > { %p476_p12 = scmp.lt.s32.totalorder (!%p409_p10), %s475_s19, 39 }
  0x19   : > { %s469_s20 = scalar_select %p468_p11, %s6255_s24, 3 }
  0x1a   : > { %s7177_s19 = smov (!%p476_p12, %s475_s19), 39  ;;  %487 = sbr.rel (%p4556_p13) target bundleno = 33 (0x21), region = 72 }
  0x1b   : > { %s4554_s27 = sshll.u32 %s469_s20, 3  ;;  %s4555_s29 = sshll.u32 %s7177_s19, 3  ;;  %v488_v0 = vld [vmem:[%s7138_s0] sm:$0xff] (!%p4556_p13)  ;;  %vm489_vm0 = vcmask (!%p4556_p13), 130048  }
  0x1c   : > { %s474_s14 = scalar_lea.vmem %s7139_s1, %s4554_s27  ;;  %s6404_s23 = scalar_lea.vmem %s7140_s2, %s4555_s29  ;;  %490 = vst.msk [vmem:[#allocation2] sm:$0xff] (!%p4556_p13), %vm489_vm0, %v488_v0 }
  0x21 PF: > { %v551_v1 = vld [vmem:[%s7148_s10] sm:$0x7f]  ;;  %vm556_vm1 = vcmask 1046528   ;;  %v6265_v3 = vmov 0.0   ;;  %vm6266_vm2 = vmmov 0   ;;  %vm552_vm3 = vcmask 56320  }
  0x22   : > { %v550_v2 = vld [vmem:[%s474_s14] sm:$0xff]  ;;  %4964 = vmatprep.subr.mxu0 %v6265_v3  ;;  %4966 = vmatprep.mubr.msk.f32.mxu0 %vm6266_vm2, %v6265_v3  ;;  %v492_v5 = vld [vmem:[%s7141_s3 + $0x8] sm:$0xff]  ;;  %v6267_v7 = vmov 0.0|0.0   ;;  %vm644_vm4 = vcmask 130048   ;;  %v6268_v10 = vmov 0   ;;  %v4604_v13 = vld [vmem:[%s6404_s23 + $0x30] sm:$0xff] }
  0x23   : > { %v491_v4 = vld [vmem:[%s7141_s3] sm:$0xff]  ;;  %4965 = vmatpush3.msk.msra.mxu0 %vm556_vm1, %v551_v1  ;;  %5700 = vmatprep.subr.bf16.mxu1 %v6267_v7  ;;  %v4574_v11 = vld [vmem:[%s6404_s23 + $0x8] sm:$0xff]  ;;  %v503_v18 = vld [vmem:[%s7144_s6 + $0x10] sm:$0xff]  ;;  %vm720_vm5 = vcmask 261120   ;;  %vm943_vm6 = vcmask 916480   ;;  %s4629_s20 = sshll.u32 %s6255_s24, 7 }
  0x24   : > { %v6423_v6 = vpack.c.bf16 %v492_v5, %v491_v4  ;;  %4967 = vmatmul.mubr.msk.f32.vlgmr.msra.gmra.mrb[0].mxu0 %vm552_vm3, %v550_v2  ;;  %5679 = vmatprep.subr.bf16.mxu0 %v6267_v7  ;;  %v631_v8 = vld [vmem:[%s6404_s23] sm:$0xff]  ;;  %v502_v16 = vld [vmem:[%s7144_s6 + $0x8] sm:$0xff]  ;;  %v504_v19 = vld [vmem:[%s7144_s6 + $0x18] sm:$0xff]  ;;  %s4446_s27 = sshll.u32 %s463_s15, 4  ;;  %s7085_s25 = scalar_lea.hbm %s7150_s12, %s4629_s20  ;;  %s7087_s27 = int_to_ptr.vmem [resolvable:$true] %s4446_s27 }
  0x25   : > { %4973 = vmatprep.mubr.msk.f32.mxu0 %vm6266_vm2, %v6265_v3  ;;  %v6431_v9 = vld [vmem:[#allocation2] sm:$0xff]  ;;  %6158 = vset.pattern.permute.xlu0 %v6268_v10  ;;  %v6460_v20 = vpack.c.bf16 %v504_v19, %v503_v18  ;;  %v4559_v31 = vld [vmem:[%s7144_s6 + $0x28] sm:$0xff]  ;;  %v4560_v35 = vld [vmem:[%s7144_s6 + $0x30] sm:$0xff]  ;;  %s7165_s24 = sand.u32 1, %s6247_s22   ;;  %s6185_s16 = scalar_lea.vmem %s7087_s27, 128 }
  0x26   : > { %5681 = vmatpush3.bf16.msra.mxu0 %v6423_v6  ;;  %634 = vperm.xlu0 %6158, %v631_v8   ;;  %v4592_v12 = vld [vmem:[%s6404_s23 + $0x20] sm:$0xff]  ;;  %v4561_v36 = vld [vmem:[%s7144_s6 + $0x38] sm:$0xff]  ;;  %v526_v44 = vld [vmem:[%s7146_s8 + $0x8] sm:$0xff]  ;;  %s4432_s29 = scalar_lea.sflag [#allocation4], %s7165_s24  ;;  %p6186_p0 = scmp.ne.s32.totalorder %s7087_s27, %s6185_s16 }
  0x27   : > { %5682 = vmatprep.subr.bf16.mxu0 %v6267_v7  ;;  %5037 = vmatprep.mubr.msk.f32.mxu1 %vm6266_vm2, %v6265_v3  ;;  %v4616_v14 = vld [vmem:[%s6404_s23 + $0x40] sm:$0xff]  ;;  %v6497_v37 = vpack.c.bf16 %v4561_v36, %v4560_v35  ;;  %v527_v45 = vld [vmem:[%s7146_s8 + $0x10] sm:$0xff]  ;;  %v528_v47 = vld [vmem:[%s7146_s8 + $0x18] sm:$0xff]  ;;  %s6269_s17 = smov [#allocation3]  }
  0x28   : > { %6159 = vset.pattern.permute.xlu1 %v6268_v10  ;;  %v501_v15 = vld [vmem:[%s7144_s6] sm:$0xff]  ;;  %v6525_v48 = vpack.c.bf16 %v528_v47, %v527_v45  ;;  %v537_v50 = vld [vmem:[%s7149_s11 + $0x8] sm:$0xff]  ;;  %v538_v51 = vld [vmem:[%s7149_s11 + $0x10] sm:$0xff]  ;;  %p6187_p1 = pnand %p6186_p0, %p6375_p4  ;;  %s6189_s19 = sshll.u32 %s6269_s17, 4  ;;  %s6190_s19 = int_to_ptr.vmem [resolvable:$false] %s6189_s19 }
  0x29   : > { %4974 = vmatmul.mubr.msk.f32.vlgmr.msra.gmra.mrb[2].mxu0 %vm644_vm4, %v6431_v9  ;;  %v6450_v17 = vpack.c.bf16 %v502_v16, %v501_v15  ;;  %v6467_v21 = vld [vmem:[%s7142_s4] ss:$0 sm:$0xff]  ;;  %v539_v53 = vld [vmem:[%s7149_s11 + $0x18] sm:$0xff]  ;;  %v541_v56 = vld [vmem:[%s7149_s11 + $0x28] sm:$0xff]  ;;  %s6191_s28 = scalar_lea.vmem %s6190_s19, 256  ;;  %p6192_p3 = scmp.lt.s32.totalorder %s7087_s27, %s6190_s19 }
  0x2a   : > { %4984 = vmatprep.mubr.msk.f32.mxu0 %vm6266_vm2, %v6265_v3  ;;  %1022 = vperm.xlu0 %6158, %v4574_v11   ;;  %v6475_v26 = vld [vmem:[%s7143_s5] ss:$0 sm:$0xff]  ;;  %v6545_v54 = vpack.c.bf16 %v539_v53, %v538_v51  ;;  %v542_v58 = vld [vmem:[%s7149_s11 + $0x30] sm:$0xff]  ;;  %v543_v59 = vld [vmem:[%s7149_s11 + $0x38] sm:$0xff]  ;;  %p6188_p2 = pneg %p6187_p1  ;;  %p6193_p5 = scmp.lt.s32.totalorder %s6191_s28, %s6185_s16 }
  0x2b   : > { %5684 = vmatpush3.bf16.msra.mxu0 %v6450_v17  ;;  %v4558_v30 = vld [vmem:[%s7144_s6 + $0x20] sm:$0xff]  ;;  %v6565_v60 = vpack.c.bf16 %v543_v59, %v542_v58  ;;  %v545_v62 = vld [vmem:[%s7149_s11 + $0x48] sm:$0xff]  ;;  %v546_v0 = vld [vmem:[%s7149_s11 + $0x50] sm:$0xff] }
  0x2c   : > { %5685 = vmatprep.subr.bf16.mxu0 %v6267_v7  ;;  %v6484_v33 = vpack.c.bf16 %v4559_v31, %v4558_v30  ;;  %v6504_v38 = vld [vmem:[%s7145_s7] ss:$0 sm:$0xff]  ;;  %v547_v1 = vld [vmem:[%s7149_s11 + $0x58] sm:$0xff]  ;;  %v6593_v4 = vld [vmem:[%s7145_s7 + $0x1] ss:$0 sm:$0xff]  ;;  %p6194_p6 = por %p6193_p5, %p6192_p3 }
  0x2d   : > { %v525_v43 = vld [vmem:[%s7146_s8] sm:$0xff]  ;;  %v6585_v2 = vpack.c.bf16 %v547_v1, %v546_v0  ;;  %v4580_v51 = vld [vmem:[%s6404_s23 + $0x10] sm:$0xff]  ;;  %v4586_v53 = vld [vmem:[%s6404_s23 + $0x18] sm:$0xff] }
  0x2e   : > { %2159 = vperm.xlu0 %6158, %v4592_v12   ;;  %v6519_v46 = vpack.c.bf16 %v526_v44, %v525_v43  ;;  %v536_v49 = vld [vmem:[%s7149_s11] sm:$0xff]  ;;  %1401 = vperm.xlu1 %6159, %v4580_v51   ;;  %v4622_v58 = vld [vmem:[%s6404_s23 + $0x48] sm:$0xff]  ;;  %p6195_p7 = pnand %p6194_p6, %p6188_p2 }
  0x2f   : > { %5687 = vmatpush3.bf16.msra.mxu0 %v6460_v20  ;;  %v6539_v52 = vpack.c.bf16 %v537_v50, %v536_v49  ;;  %v540_v55 = vld [vmem:[%s7149_s11 + $0x20] sm:$0xff] }
  0x30   : > { %5688 = vmatprep.subr.bf16.mxu0 %v6267_v7  ;;  %v6555_v57 = vpack.c.bf16 %v541_v56, %v540_v55  ;;  %v544_v61 = vld [vmem:[%s7149_s11 + $0x40] sm:$0xff]  ;;  %v4598_v55 = vld [vmem:[%s6404_s23 + $0x28] sm:$0xff]  ;;  %v4610_v56 = vld [vmem:[%s6404_s23 + $0x38] sm:$0xff] }
  0x31   : > { %5702 = vmatpush3.bf16.msra.mxu1 %v6539_v52  ;;  %v6575_v63 = vpack.c.bf16 %v545_v62, %v544_v61  ;;  %v548_v12 = vld [vmem:[%s7149_s11 + $0x60] sm:$0xff] }
  0x32   : > { %2917 = vperm.xlu0 %6158, %v4604_v13   ;;  %5703 = vmatprep.subr.bf16.mxu1 %v6267_v7  ;;  %v549_v13 = vld [vmem:[%s7149_s11 + $0x68] sm:$0xff]  ;;  %v6614_v15 = vld [vmem:[%s7147_s9] ss:$0 sm:$0xff] }
  0x33   : > { %1780 = vperm.xlu1 %6159, %v4586_v53  }
  0x35   : > { %5705 = vmatpush3.bf16.msra.mxu1 %v6545_v54 }
  0x36   : > { %3675 = vperm.xlu0 %6158, %v4616_v14   ;;  %5706 = vmatprep.subr.bf16.mxu1 %v6267_v7  ;;  %v6607_v14 = vpack.c.bf16 %v549_v13, %v548_v12 }
  0x37   : > { %2538 = vperm.xlu1 %6159, %v4598_v55  }
  0x39   : > { %5708 = vmatpush3.bf16.msra.mxu1 %v6555_v57 }
  0x3a   : > { %5709 = vmatprep.subr.bf16.mxu1 %v6267_v7 }
  0x3b   : > { %3296 = vperm.xlu1 %6159, %v4610_v56  }
  0x3d   : > { %5711 = vmatpush3.bf16.msra.mxu1 %v6565_v60 }
  0x3e   : > { %5712 = vmatprep.subr.bf16.mxu1 %v6267_v7 }
  0x3f   : > { %4054 = vperm.xlu1 %6159, %v4622_v58  }
  0x41   : > { %5714 = vmatpush3.bf16.msra.mxu1 %v6575_v63 }
  0x42   : > { %5715 = vmatprep.subr.bf16.mxu1 %v6267_v7 }
  0x45   : > { %5717 = vmatpush3.bf16.msra.mxu1 %v6585_v2 }
  0x46   : > { %5718 = vmatprep.subr.bf16.mxu1 %v6267_v7 }
  0x49   : > { %5720 = vmatpush3.bf16.msra.mxu1 %v6607_v14 }
  0x4a   : > { %5742 = vmatprep.subr.bf16.mxu1 %v6267_v7 }
  0xa5   : > { %v635_v22 = vpop.permute.xlu0 %634 }
  0xa6   : > { %v643_v24 = vmul.f32 %v6467_v21, %v635_v22 }
  0xad   : > { %v1402_v0 = vpop.permute.xlu1 %1401 }
  0xae   : > { %v1404_v1 = vmul.f32 %v6467_v21, %v1402_v0 }
  0xf7   : > { %v6469_v23 = vpop.f32.mrb[0].mxu0 }
  0xf8   : > { %v4968_v25 = vpop.f32.mrb[1].mxu0 }
  0xfc   : > { %v714_v27 = vpop.f32.mrb[2].mxu0 }
  0xfd   : > { %v715_v28 = vadd.f32 %v714_v27, %v643_v24  ;;  %v4975_v29 = vpop.f32.mrb[3].mxu0 }
  0xff   : > { %v718_v32 = vadd.f32 %v6475_v26, %v715_v28  ;;  %v1023_v28 = vpop.permute.xlu0 %1022 }
 0x100   : > { %v1025_v29 = vmul.f32 %v6467_v21, %v1023_v28 }
 0x101   : > { %v719_v34 = vmax.f32 %v718_v32, 0.0 }
 0x103   : > { %4985 = vmatmul.mubr.msk.f32.vlgmr.msra.gmra.mrb[4].mxu0 %vm720_vm5, %v719_v34 }
 0x104   : > { %5690 = vmatpush3.bf16.msra.mxu0 %v6484_v33  ;;  %4995 = vmatprep.mubr.msk.f32.mxu0 %vm6266_vm2, %v6265_v3 }
 0x105   : > { %5691 = vmatprep.subr.bf16.mxu0 %v6267_v7 }
 0x108   : > { %5693 = vmatpush3.bf16.msra.mxu0 %v6497_v37 }
 0x109   : > { %5694 = vmatprep.subr.bf16.mxu0 %v6267_v7 }
 0x1d6   : > { %v790_v39 = vpop.f32.mrb[4].mxu0 }
 0x1d7   : > { %v791_v40 = vadd.f32 %v6504_v38, %v790_v39  ;;  %v4986_v41 = vpop.f32.mrb[5].mxu0 }
 0x1d9   : > { %v794_v42 = vmax.f32 %v791_v40, 0.0 }
 0x1db   : > { %4996 = vmatmul.mubr.msk.f32.vlgmr.msra.gmra.mrb[6].mxu0 %vm720_vm5, %v794_v42 }
 0x1dc   : > { %5006 = vmatprep.mubr.msk.f32.mxu0 %vm6266_vm2, %v6265_v3  ;;  %5696 = vmatpush3.bf16.msra.mxu0 %v6519_v46 }
 0x1dd   : > { %5697 = vmatprep.subr.bf16.mxu0 %v6267_v7 }
 0x1e0   : > { %5699 = vmatpush3.bf16.msra.mxu0 %v6525_v48 }
 0x1e1   : > { %5721 = vmatprep.subr.bf16.mxu0 %v6267_v7 }
 0x2ae   : > { %v864_v5 = vpop.f32.mrb[6].mxu0 }
 0x2af   : > { %v865_v8 = vadd.f32 %v6593_v4, %v864_v5  ;;  %v4997_v10 = vpop.f32.mrb[7].mxu0 }
 0x2b1   : > { %6160 = vtanh.f32 %v865_v8 }
 0x2bb   : > { %v6161_v11 = vpop.eup %6160 }
 0x2bc   : > { %5007 = vmatmul.mubr.msk.f32.vlgmr.msra.gmra.mrb[8].mxu0 %vm720_vm5, %v6161_v11 }
 0x2bd   : > { %5723 = vmatpush3.bf16.msra.mxu0 %v6423_v6  ;;  %5044 = vmatprep.mubr.msk.f32.mxu0 %vm6266_vm2, %v6265_v3 }
 0x2be   : > { %5724 = vmatprep.subr.bf16.mxu0 %v6267_v7 }
 0x38f   : > { %v938_v16 = vpop.f32.mrb[8].mxu0 }
 0x390   : > { %v939_v18 = vadd.f32 %v6614_v15, %v938_v16  ;;  %v5008_v19 = vpop.f32.mrb[9].mxu0 }
 0x392   : > { %v942_v22 = vmul.f32 %v939_v18, %v6469_v23 }
 0x394   : > { %5038 = vmatmul.mubr.msk.f32.vlgmr.msra.gmra.mrb[0].mxu1 %vm943_vm6, %v942_v22 }
 0x395   : > { %5744 = vmatpush3.bf16.msra.mxu1 %v6539_v52  ;;  %5108 = vmatprep.mubr.msk.f32.mxu1 %vm6266_vm2, %v6265_v3 }
 0x396   : > { %5745 = vmatprep.subr.bf16.mxu1 %v6267_v7 }
 0x399   : > { %5747 = vmatpush3.bf16.msra.mxu1 %v6545_v54 }
 0x39a   : > { %5748 = vmatprep.subr.bf16.mxu1 %v6267_v7 }
 0x39d   : > { %5750 = vmatpush3.bf16.msra.mxu1 %v6555_v57 }
 0x39e   : > { %5751 = vmatprep.subr.bf16.mxu1 %v6267_v7 }
 0x3a1   : > { %5753 = vmatpush3.bf16.msra.mxu1 %v6565_v60 }
 0x3a2   : > { %5754 = vmatprep.subr.bf16.mxu1 %v6267_v7 }
 0x3a5   : > { %5756 = vmatpush3.bf16.msra.mxu1 %v6575_v63 }
 0x3a6   : > { %5757 = vmatprep.subr.bf16.mxu1 %v6267_v7 }
 0x3a9   : > { %5759 = vmatpush3.bf16.msra.mxu1 %v6585_v2 }
 0x3aa   : > { %5760 = vmatprep.subr.bf16.mxu1 %v6267_v7 }
 0x3ad   : > { %5762 = vmatpush3.bf16.msra.mxu1 %v6607_v14 }
 0x3ae   : > { %5784 = vmatprep.subr.bf16.mxu1 %v6267_v7 }
 0x467   : > { %v1013_v24 = vpop.f32.mrb[0].mxu1 }
 0x468   : > { %v6636_v25 = vadd.f32 %v1013_v24, %v6431_v9  ;;  %v5039_v27 = vpop.f32.mrb[1].mxu1 }
 0x46a   : > { %5045 = vmatmul.mubr.msk.f32.vlgmr.msra.gmra.mrb[10].mxu0 %vm644_vm4, %v6636_v25 }
 0x46b   : > { %5726 = vmatpush3.bf16.msra.mxu0 %v6450_v17  ;;  %5055 = vmatprep.mubr.msk.f32.mxu0 %vm6266_vm2, %v6265_v3 }
 0x46c   : > { %5727 = vmatprep.subr.bf16.mxu0 %v6267_v7 }
 0x46f   : > { %5729 = vmatpush3.bf16.msra.mxu0 %v6460_v20 }
 0x470   : > { %5730 = vmatprep.subr.bf16.mxu0 %v6267_v7 }
 0x53d   : > { %v1095_v9 = vpop.f32.mrb[10].mxu0 }
 0x53e   : > { %v1096_v30 = vadd.f32 %v1095_v9, %v1025_v29  ;;  %v5046_v31 = vpop.f32.mrb[11].mxu0 }
 0x540   : > { %v1099_v32 = vadd.f32 %v6475_v26, %v1096_v30 }
 0x542   : > { %v1100_v34 = vmax.f32 %v1099_v32, 0.0 }
 0x544   : > { %5056 = vmatmul.mubr.msk.f32.vlgmr.msra.gmra.mrb[12].mxu0 %vm720_vm5, %v1100_v34 }
 0x545   : > { %5732 = vmatpush3.bf16.msra.mxu0 %v6484_v33  ;;  %5066 = vmatprep.mubr.msk.f32.mxu0 %vm6266_vm2, %v6265_v3 }
 0x546   : > { %5733 = vmatprep.subr.bf16.mxu0 %v6267_v7 }
 0x549   : > { %5735 = vmatpush3.bf16.msra.mxu0 %v6497_v37 }
 0x54a   : > { %5736 = vmatprep.subr.bf16.mxu0 %v6267_v7 }
 0x617   : > { %v1170_v35 = vpop.f32.mrb[12].mxu0 }
 0x618   : > { %v1171_v36 = vadd.f32 %v6504_v38, %v1170_v35  ;;  %v5057_v39 = vpop.f32.mrb[13].mxu0  ;;  %v1781_v35 = vpop.permute.xlu1 %1780 }
 0x61a   : > { %v1174_v40 = vmax.f32 %v1171_v36, 0.0  ;;  %v1783_v36 = vmul.f32 %v6467_v21, %v1781_v35 }
 0x61c   : > { %5067 = vmatmul.mubr.msk.f32.vlgmr.msra.gmra.mrb[14].mxu0 %vm720_vm5, %v1174_v40 }
 0x61d   : > { %5738 = vmatpush3.bf16.msra.mxu0 %v6519_v46  ;;  %5077 = vmatprep.mubr.msk.f32.mxu0 %vm6266_vm2, %v6265_v3 }
 0x61e   : > { %5739 = vmatprep.subr.bf16.mxu0 %v6267_v7 }
 0x621   : > { %5741 = vmatpush3.bf16.msra.mxu0 %v6525_v48 }
 0x622   : > { %5763 = vmatprep.subr.bf16.mxu0 %v6267_v7 }
 0x6ef   : > { %v1244_v41 = vpop.f32.mrb[14].mxu0 }
 0x6f0   : > { %v1245_v42 = vadd.f32 %v6593_v4, %v1244_v41  ;;  %v5068_v43 = vpop.f32.mrb[15].mxu0 }
 0x6f2   : > { %6162 = vtanh.f32 %v1245_v42 }
 0x6fc   : > { %v6163_v44 = vpop.eup %6162 }
 0x6fd   : > { %5078 = vmatmul.mubr.msk.f32.vlgmr.msra.gmra.mrb[16].mxu0 %vm720_vm5, %v6163_v44 }
 0x6fe   : > { %5765 = vmatpush3.bf16.msra.mxu0 %v6423_v6  ;;  %5115 = vmatprep.mubr.msk.f32.mxu0 %vm6266_vm2, %v6265_v3 }
 0x6ff   : > { %5766 = vmatprep.subr.bf16.mxu0 %v6267_v7 }
 0x7d0   : > { %v1318_v45 = vpop.f32.mrb[16].mxu0 }
 0x7d1   : > { %v1319_v47 = vadd.f32 %v6614_v15, %v1318_v45  ;;  %v5079_v49 = vpop.f32.mrb[17].mxu0 }
 0x7d3   : > { %v1322_v50 = vmul.f32 %v1319_v47, %v6469_v23 }
 0x7d5   : > { %5109 = vmatmul.mubr.msk.f32.vlgmr.msra.gmra.mrb[2].mxu1 %vm943_vm6, %v1322_v50 }
 0x7d6   : > { %5786 = vmatpush3.bf16.msra.mxu1 %v6539_v52  ;;  %5179 = vmatprep.mubr.msk.f32.mxu1 %vm6266_vm2, %v6265_v3 }
 0x7d7   : > { %5787 = vmatprep.subr.bf16.mxu1 %v6267_v7 }
 0x7da   : > { %5789 = vmatpush3.bf16.msra.mxu1 %v6545_v54 }
 0x7db   : > { %5790 = vmatprep.subr.bf16.mxu1 %v6267_v7 }
 0x7de   : > { %5792 = vmatpush3.bf16.msra.mxu1 %v6555_v57 }
 0x7df   : > { %5793 = vmatprep.subr.bf16.mxu1 %v6267_v7 }
 0x7e2   : > { %5795 = vmatpush3.bf16.msra.mxu1 %v6565_v60 }
 0x7e3   : > { %5796 = vmatprep.subr.bf16.mxu1 %v6267_v7 }
 0x7e6   : > { %5798 = vmatpush3.bf16.msra.mxu1 %v6575_v63 }
 0x7e7   : > { %5799 = vmatprep.subr.bf16.mxu1 %v6267_v7 }
 0x7ea   : > { %5801 = vmatpush3.bf16.msra.mxu1 %v6585_v2 }
 0x7eb   : > { %5802 = vmatprep.subr.bf16.mxu1 %v6267_v7 }
 0x7ee   : > { %5804 = vmatpush3.bf16.msra.mxu1 %v6607_v14 }
 0x7ef   : > { %5826 = vmatprep.subr.bf16.mxu1 %v6267_v7 }
 0x8a8   : > { %v1392_v59 = vpop.f32.mrb[2].mxu1 }
 0x8a9   : > { %v1396_v61 = vadd.f32 %v1392_v59, %v6636_v25  ;;  %v5110_v62 = vpop.f32.mrb[3].mxu1 }
 0x8ab   : > { %5116 = vmatmul.mubr.msk.f32.vlgmr.msra.gmra.mrb[18].mxu0 %vm644_vm4, %v1396_v61 }
 0x8ac   : > { %5768 = vmatpush3.bf16.msra.mxu0 %v6450_v17  ;;  %5126 = vmatprep.mubr.msk.f32.mxu0 %vm6266_vm2, %v6265_v3 }
 0x8ad   : > { %5769 = vmatprep.subr.bf16.mxu0 %v6267_v7 }
 0x8b0   : > { %5771 = vmatpush3.bf16.msra.mxu0 %v6460_v20 }
 0x8b1   : > { %5772 = vmatprep.subr.bf16.mxu0 %v6267_v7 }
 0x97e   : > { %v1474_v5 = vpop.f32.mrb[18].mxu0 }
 0x97f   : > { %v1475_v8 = vadd.f32 %v1474_v5, %v1404_v1  ;;  %v5117_v10 = vpop.f32.mrb[19].mxu0  ;;  %v2160_v5 = vpop.permute.xlu0 %2159 }
 0x981   : > { %v1478_v11 = vadd.f32 %v6475_v26, %v1475_v8  ;;  %v2162_v8 = vmul.f32 %v6467_v21, %v2160_v5 }
 0x983   : > { %v1479_v12 = vmax.f32 %v1478_v11, 0.0 }
 0x985   : > { %5127 = vmatmul.mubr.msk.f32.vlgmr.msra.gmra.mrb[20].mxu0 %vm720_vm5, %v1479_v12 }
 0x986   : > { %5774 = vmatpush3.bf16.msra.mxu0 %v6484_v33  ;;  %5137 = vmatprep.mubr.msk.f32.mxu0 %vm6266_vm2, %v6265_v3 }
 0x987   : > { %5775 = vmatprep.subr.bf16.mxu0 %v6267_v7 }
 0x98a   : > { %5777 = vmatpush3.bf16.msra.mxu0 %v6497_v37 }
 0x98b   : > { %5778 = vmatprep.subr.bf16.mxu0 %v6267_v7 }
 0xa58   : > { %v1549_v13 = vpop.f32.mrb[20].mxu0 }
 0xa59   : > { %v1550_v16 = vadd.f32 %v6504_v38, %v1549_v13  ;;  %v5128_v18 = vpop.f32.mrb[21].mxu0 }
 0xa5b   : > { %v1553_v19 = vmax.f32 %v1550_v16, 0.0 }
 0xa5d   : > { %5138 = vmatmul.mubr.msk.f32.vlgmr.msra.gmra.mrb[22].mxu0 %vm720_vm5, %v1553_v19 }
 0xa5e   : > { %5780 = vmatpush3.bf16.msra.mxu0 %v6519_v46  ;;  %5148 = vmatprep.mubr.msk.f32.mxu0 %vm6266_vm2, %v6265_v3 }
 0xa5f   : > { %5781 = vmatprep.subr.bf16.mxu0 %v6267_v7 }
 0xa62   : > { %5783 = vmatpush3.bf16.msra.mxu0 %v6525_v48 }
 0xa63   : > { %5805 = vmatprep.subr.bf16.mxu0 %v6267_v7 }
 0xb30   : > { %v1623_v22 = vpop.f32.mrb[22].mxu0 }
 0xb31   : > { %v1624_v24 = vadd.f32 %v6593_v4, %v1623_v22  ;;  %v5139_v25 = vpop.f32.mrb[23].mxu0 }
 0xb33   : > { %6164 = vtanh.f32 %v1624_v24 }
 0xb3d   : > { %v6165_v27 = vpop.eup %6164 }
 0xb3e   : > { %5149 = vmatmul.mubr.msk.f32.vlgmr.msra.gmra.mrb[24].mxu0 %vm720_vm5, %v6165_v27 }
 0xb3f   : > { %5807 = vmatpush3.bf16.msra.mxu0 %v6423_v6  ;;  %5186 = vmatprep.mubr.msk.f32.mxu0 %vm6266_vm2, %v6265_v3 }
 0xb40   : > { %5808 = vmatprep.subr.bf16.mxu0 %v6267_v7 }
 0xc11   : > { %v1697_v28 = vpop.f32.mrb[24].mxu0 }
 0xc12   : > { %v1698_v29 = vadd.f32 %v6614_v15, %v1697_v28  ;;  %v5150_v9 = vpop.f32.mrb[25].mxu0 }
 0xc14   : > { %v1701_v30 = vmul.f32 %v1698_v29, %v6469_v23 }
 0xc16   : > { %5180 = vmatmul.mubr.msk.f32.vlgmr.msra.gmra.mrb[4].mxu1 %vm943_vm6, %v1701_v30 }
 0xc17   : > { %5828 = vmatpush3.bf16.msra.mxu1 %v6539_v52  ;;  %5250 = vmatprep.mubr.msk.f32.mxu1 %vm6266_vm2, %v6265_v3 }
 0xc18   : > { %5829 = vmatprep.subr.bf16.mxu1 %v6267_v7 }
 0xc1b   : > { %5831 = vmatpush3.bf16.msra.mxu1 %v6545_v54 }
 0xc1c   : > { %5832 = vmatprep.subr.bf16.mxu1 %v6267_v7 }
 0xc1f   : > { %5834 = vmatpush3.bf16.msra.mxu1 %v6555_v57 }
 0xc20   : > { %5835 = vmatprep.subr.bf16.mxu1 %v6267_v7 }
 0xc23   : > { %5837 = vmatpush3.bf16.msra.mxu1 %v6565_v60 }
 0xc24   : > { %5838 = vmatprep.subr.bf16.mxu1 %v6267_v7 }
 0xc27   : > { %5840 = vmatpush3.bf16.msra.mxu1 %v6575_v63 }
 0xc28   : > { %5841 = vmatprep.subr.bf16.mxu1 %v6267_v7 }
 0xc2b   : > { %5843 = vmatpush3.bf16.msra.mxu1 %v6585_v2 }
 0xc2c   : > { %5844 = vmatprep.subr.bf16.mxu1 %v6267_v7 }
 0xc2f   : > { %5846 = vmatpush3.bf16.msra.mxu1 %v6607_v14 }
 0xc30   : > { %5868 = vmatprep.subr.bf16.mxu1 %v6267_v7 }
 0xce9   : > { %v1771_v31 = vpop.f32.mrb[4].mxu1 }
 0xcea   : > { %v1775_v32 = vadd.f32 %v1771_v31, %v1396_v61  ;;  %v5181_v34 = vpop.f32.mrb[5].mxu1 }
 0xcec   : > { %5187 = vmatmul.mubr.msk.f32.vlgmr.msra.gmra.mrb[26].mxu0 %vm644_vm4, %v1775_v32 }
 0xced   : > { %5810 = vmatpush3.bf16.msra.mxu0 %v6450_v17  ;;  %5197 = vmatprep.mubr.msk.f32.mxu0 %vm6266_vm2, %v6265_v3 }
 0xcee   : > { %5811 = vmatprep.subr.bf16.mxu0 %v6267_v7 }
 0xcf1   : > { %5813 = vmatpush3.bf16.msra.mxu0 %v6460_v20 }
 0xcf2   : > { %5814 = vmatprep.subr.bf16.mxu0 %v6267_v7 }
 0xdbf   : > { %v1853_v39 = vpop.f32.mrb[26].mxu0 }
 0xdc0   : > { %v1854_v40 = vadd.f32 %v1853_v39, %v1783_v36  ;;  %v5188_v41 = vpop.f32.mrb[27].mxu0  ;;  %v2539_v39 = vpop.permute.xlu1 %2538 }
 0xdc2   : > { %v1857_v42 = vadd.f32 %v6475_v26, %v1854_v40  ;;  %v2541_v40 = vmul.f32 %v6467_v21, %v2539_v39 }
 0xdc4   : > { %v1858_v43 = vmax.f32 %v1857_v42, 0.0 }
 0xdc6   : > { %5198 = vmatmul.mubr.msk.f32.vlgmr.msra.gmra.mrb[28].mxu0 %vm720_vm5, %v1858_v43 }
 0xdc7   : > { %5816 = vmatpush3.bf16.msra.mxu0 %v6484_v33  ;;  %5208 = vmatprep.mubr.msk.f32.mxu0 %vm6266_vm2, %v6265_v3 }
 0xdc8   : > { %5817 = vmatprep.subr.bf16.mxu0 %v6267_v7 }
 0xdcb   : > { %5819 = vmatpush3.bf16.msra.mxu0 %v6497_v37 }
 0xdcc   : > { %5820 = vmatprep.subr.bf16.mxu0 %v6267_v7 }
 0xe99   : > { %v1928_v44 = vpop.f32.mrb[28].mxu0 }
 0xe9a   : > { %v1929_v45 = vadd.f32 %v6504_v38, %v1928_v44  ;;  %v5199_v47 = vpop.f32.mrb[29].mxu0 }
 0xe9c   : > { %v1932_v49 = vmax.f32 %v1929_v45, 0.0 }
 0xe9e   : > { %5209 = vmatmul.mubr.msk.f32.vlgmr.msra.gmra.mrb[30].mxu0 %vm720_vm5, %v1932_v49 }
 0xe9f   : > { %5822 = vmatpush3.bf16.msra.mxu0 %v6519_v46  ;;  %5219 = vmatprep.mubr.msk.f32.mxu0 %vm6266_vm2, %v6265_v3 }
 0xea0   : > { %5823 = vmatprep.subr.bf16.mxu0 %v6267_v7 }
 0xea3   : > { %5825 = vmatpush3.bf16.msra.mxu0 %v6525_v48 }
 0xea4   : > { %5847 = vmatprep.subr.bf16.mxu0 %v6267_v7 }
 0xf71   : > { %v2002_v50 = vpop.f32.mrb[30].mxu0 }
 0xf72   : > { %v2003_v51 = vadd.f32 %v6593_v4, %v2002_v50  ;;  %v5210_v53 = vpop.f32.mrb[31].mxu0 }
 0xf74   : > { %6166 = vtanh.f32 %v2003_v51 }
 0xf7e   : > { %v6167_v55 = vpop.eup %6166 }
 0xf7f   : > { %5220 = vmatmul.mubr.msk.f32.vlgmr.msra.gmra.mrb[32].mxu0 %vm720_vm5, %v6167_v55 }
 0xf80   : > { %5849 = vmatpush3.bf16.msra.mxu0 %v6423_v6  ;;  %5257 = vmatprep.mubr.msk.f32.mxu0 %vm6266_vm2, %v6265_v3 }
 0xf81   : > { %5850 = vmatprep.subr.bf16.mxu0 %v6267_v7 }
0x1052   : > { %v2076_v56 = vpop.f32.mrb[32].mxu0 }
0x1053   : > { %v2077_v58 = vadd.f32 %v6614_v15, %v2076_v56  ;;  %v5221_v59 = vpop.f32.mrb[33].mxu0 }
0x1055   : > { %v2080_v61 = vmul.f32 %v2077_v58, %v6469_v23 }
0x1057   : > { %5251 = vmatmul.mubr.msk.f32.vlgmr.msra.gmra.mrb[6].mxu1 %vm943_vm6, %v2080_v61 }
0x1058   : > { %5870 = vmatpush3.bf16.msra.mxu1 %v6539_v52  ;;  %5321 = vmatprep.mubr.msk.f32.mxu1 %vm6266_vm2, %v6265_v3 }
0x1059   : > { %5871 = vmatprep.subr.bf16.mxu1 %v6267_v7 }
0x105c   : > { %5873 = vmatpush3.bf16.msra.mxu1 %v6545_v54 }
0x105d   : > { %5874 = vmatprep.subr.bf16.mxu1 %v6267_v7 }
0x1060   : > { %5876 = vmatpush3.bf16.msra.mxu1 %v6555_v57 }
0x1061   : > { %5877 = vmatprep.subr.bf16.mxu1 %v6267_v7 }
0x1064   : > { %5879 = vmatpush3.bf16.msra.mxu1 %v6565_v60 }
0x1065   : > { %5880 = vmatprep.subr.bf16.mxu1 %v6267_v7 }
0x1068   : > { %5882 = vmatpush3.bf16.msra.mxu1 %v6575_v63 }
0x1069   : > { %5883 = vmatprep.subr.bf16.mxu1 %v6267_v7 }
0x106c   : > { %5885 = vmatpush3.bf16.msra.mxu1 %v6585_v2 }
0x106d   : > { %5886 = vmatprep.subr.bf16.mxu1 %v6267_v7 }
0x1070   : > { %5888 = vmatpush3.bf16.msra.mxu1 %v6607_v14 }
0x1071   : > { %5910 = vmatprep.subr.bf16.mxu1 %v6267_v7 }
0x112a   : > { %v2150_v62 = vpop.f32.mrb[6].mxu1 }
0x112b   : > { %v2154_v0 = vadd.f32 %v2150_v62, %v1775_v32  ;;  %v5252_v1 = vpop.f32.mrb[7].mxu1 }
0x112d   : > { %5258 = vmatmul.mubr.msk.f32.vlgmr.msra.gmra.mrb[34].mxu0 %vm644_vm4, %v2154_v0 }
0x112e   : > { %5852 = vmatpush3.bf16.msra.mxu0 %v6450_v17  ;;  %5268 = vmatprep.mubr.msk.f32.mxu0 %vm6266_vm2, %v6265_v3 }
0x112f   : > { %5853 = vmatprep.subr.bf16.mxu0 %v6267_v7 }
0x1132   : > { %5855 = vmatpush3.bf16.msra.mxu0 %v6460_v20 }
0x1133   : > { %5856 = vmatprep.subr.bf16.mxu0 %v6267_v7 }
0x1200   : > { %v2232_v10 = vpop.f32.mrb[34].mxu0 }
0x1201   : > { %v2233_v11 = vadd.f32 %v2232_v10, %v2162_v8  ;;  %v5259_v12 = vpop.f32.mrb[35].mxu0  ;;  %v2918_v10 = vpop.permute.xlu0 %2917 }
0x1203   : > { %v2236_v13 = vadd.f32 %v6475_v26, %v2233_v11  ;;  %v2920_v11 = vmul.f32 %v6467_v21, %v2918_v10  ;;  %v7001_v10 = vld [vmem:[%s7142_s4] ss:$0 sm:$0xff] }
0x1205   : > { %v2237_v16 = vmax.f32 %v2236_v13, 0.0 }
0x1207   : > { %5269 = vmatmul.mubr.msk.f32.vlgmr.msra.gmra.mrb[36].mxu0 %vm720_vm5, %v2237_v16 }
0x1208   : > { %5858 = vmatpush3.bf16.msra.mxu0 %v6484_v33  ;;  %5279 = vmatprep.mubr.msk.f32.mxu0 %vm6266_vm2, %v6265_v3 }
0x1209   : > { %5859 = vmatprep.subr.bf16.mxu0 %v6267_v7 }
0x120c   : > { %5861 = vmatpush3.bf16.msra.mxu0 %v6497_v37 }
0x120d   : > { %5862 = vmatprep.subr.bf16.mxu0 %v6267_v7 }
0x12da   : > { %v2307_v18 = vpop.f32.mrb[36].mxu0 }
0x12db   : > { %v2308_v19 = vadd.f32 %v6504_v38, %v2307_v18  ;;  %v5270_v22 = vpop.f32.mrb[37].mxu0 }
0x12dd   : > { %v2311_v24 = vmax.f32 %v2308_v19, 0.0 }
0x12df   : > { %5280 = vmatmul.mubr.msk.f32.vlgmr.msra.gmra.mrb[38].mxu0 %vm720_vm5, %v2311_v24 }
0x12e0   : > { %5864 = vmatpush3.bf16.msra.mxu0 %v6519_v46  ;;  %5290 = vmatprep.mubr.msk.f32.mxu0 %vm6266_vm2, %v6265_v3 }
0x12e1   : > { %5865 = vmatprep.subr.bf16.mxu0 %v6267_v7 }
0x12e4   : > { %5867 = vmatpush3.bf16.msra.mxu0 %v6525_v48 }
0x12e5   : > { %5889 = vmatprep.subr.bf16.mxu0 %v6267_v7 }
0x13b2   : > { %v2381_v25 = vpop.f32.mrb[38].mxu0 }
0x13b3   : > { %v2382_v27 = vadd.f32 %v6593_v4, %v2381_v25  ;;  %v5281_v28 = vpop.f32.mrb[39].mxu0 }
0x13b5   : > { %6168 = vtanh.f32 %v2382_v27 }
0x13bf   : > { %v6169_v29 = vpop.eup %6168 }
0x13c0   : > { %5291 = vmatmul.mubr.msk.f32.vlgmr.msra.gmra.mrb[40].mxu0 %vm720_vm5, %v6169_v29 }
0x13c1   : > { %5891 = vmatpush3.bf16.msra.mxu0 %v6423_v6  ;;  %5328 = vmatprep.mubr.msk.f32.mxu0 %vm6266_vm2, %v6265_v3 }
0x13c2   : > { %5892 = vmatprep.subr.bf16.mxu0 %v6267_v7 }
0x1493   : > { %v2455_v9 = vpop.f32.mrb[40].mxu0 }
0x1494   : > { %v2456_v30 = vadd.f32 %v6614_v15, %v2455_v9  ;;  %v5292_v31 = vpop.f32.mrb[41].mxu0 }
0x1496   : > { %v2459_v32 = vmul.f32 %v2456_v30, %v6469_v23 }
0x1498   : > { %5322 = vmatmul.mubr.msk.f32.vlgmr.msra.gmra.mrb[8].mxu1 %vm943_vm6, %v2459_v32 }
0x1499   : > { %5912 = vmatpush3.bf16.msra.mxu1 %v6539_v52  ;;  %5392 = vmatprep.mubr.msk.f32.mxu1 %vm6266_vm2, %v6265_v3 }
0x149a   : > { %5913 = vmatprep.subr.bf16.mxu1 %v6267_v7 }
0x149d   : > { %5915 = vmatpush3.bf16.msra.mxu1 %v6545_v54 }
0x149e   : > { %5916 = vmatprep.subr.bf16.mxu1 %v6267_v7 }
0x14a1   : > { %5918 = vmatpush3.bf16.msra.mxu1 %v6555_v57 }
0x14a2   : > { %5919 = vmatprep.subr.bf16.mxu1 %v6267_v7 }
0x14a5   : > { %5921 = vmatpush3.bf16.msra.mxu1 %v6565_v60 }
0x14a6   : > { %5922 = vmatprep.subr.bf16.mxu1 %v6267_v7 }
0x14a9   : > { %5924 = vmatpush3.bf16.msra.mxu1 %v6575_v63 }
0x14aa   : > { %5925 = vmatprep.subr.bf16.mxu1 %v6267_v7 }
0x14ad   : > { %5927 = vmatpush3.bf16.msra.mxu1 %v6585_v2 }
0x14ae   : > { %5928 = vmatprep.subr.bf16.mxu1 %v6267_v7 }
0x14b1   : > { %5930 = vmatpush3.bf16.msra.mxu1 %v6607_v14 }
0x14b2   : > { %5952 = vmatprep.subr.bf16.mxu1 %v6267_v7 }
0x156b   : > { %v2529_v34 = vpop.f32.mrb[8].mxu1 }
0x156c   : > { %v2533_v35 = vadd.f32 %v2529_v34, %v2154_v0  ;;  %v5323_v36 = vpop.f32.mrb[9].mxu1 }
0x156e   : > { %5329 = vmatmul.mubr.msk.f32.vlgmr.msra.gmra.mrb[42].mxu0 %vm644_vm4, %v2533_v35 }
0x156f   : > { %5894 = vmatpush3.bf16.msra.mxu0 %v6450_v17  ;;  %5339 = vmatprep.mubr.msk.f32.mxu0 %vm6266_vm2, %v6265_v3 }
0x1570   : > { %5895 = vmatprep.subr.bf16.mxu0 %v6267_v7 }
0x1573   : > { %5897 = vmatpush3.bf16.msra.mxu0 %v6460_v20 }
0x1574   : > { %5898 = vmatprep.subr.bf16.mxu0 %v6267_v7 }
0x1641   : > { %v2611_v41 = vpop.f32.mrb[42].mxu0 }
0x1642   : > { %v2612_v42 = vadd.f32 %v2611_v41, %v2541_v40  ;;  %v5330_v43 = vpop.f32.mrb[43].mxu0  ;;  %v3297_v41 = vpop.permute.xlu1 %3296 }
0x1644   : > { %v2615_v44 = vadd.f32 %v6475_v26, %v2612_v42  ;;  %v3299_v42 = vmul.f32 %v6467_v21, %v3297_v41 }
0x1646   : > { %v2616_v45 = vmax.f32 %v2615_v44, 0.0 }
0x1648   : > { %5340 = vmatmul.mubr.msk.f32.vlgmr.msra.gmra.mrb[44].mxu0 %vm720_vm5, %v2616_v45 }
0x1649   : > { %5900 = vmatpush3.bf16.msra.mxu0 %v6484_v33  ;;  %5350 = vmatprep.mubr.msk.f32.mxu0 %vm6266_vm2, %v6265_v3 }
0x164a   : > { %5901 = vmatprep.subr.bf16.mxu0 %v6267_v7 }
0x164d   : > { %5903 = vmatpush3.bf16.msra.mxu0 %v6497_v37 }
0x164e   : > { %5904 = vmatprep.subr.bf16.mxu0 %v6267_v7 }
0x171b   : > { %v2686_v47 = vpop.f32.mrb[44].mxu0 }
0x171c   : > { %v2687_v49 = vadd.f32 %v6504_v38, %v2686_v47  ;;  %v5341_v50 = vpop.f32.mrb[45].mxu0 }
0x171e   : > { %v2690_v51 = vmax.f32 %v2687_v49, 0.0 }
0x1720   : > { %5351 = vmatmul.mubr.msk.f32.vlgmr.msra.gmra.mrb[46].mxu0 %vm720_vm5, %v2690_v51 }
0x1721   : > { %5906 = vmatpush3.bf16.msra.mxu0 %v6519_v46  ;;  %5361 = vmatprep.mubr.msk.f32.mxu0 %vm6266_vm2, %v6265_v3 }
0x1722   : > { %5907 = vmatprep.subr.bf16.mxu0 %v6267_v7 }
0x1725   : > { %5909 = vmatpush3.bf16.msra.mxu0 %v6525_v48 }
0x1726   : > { %5931 = vmatprep.subr.bf16.mxu0 %v6267_v7 }
0x17f3   : > { %v2760_v53 = vpop.f32.mrb[46].mxu0 }
0x17f4   : > { %v2761_v55 = vadd.f32 %v6593_v4, %v2760_v53  ;;  %v5352_v56 = vpop.f32.mrb[47].mxu0 }
0x17f6   : > { %6170 = vtanh.f32 %v2761_v55 }
0x1800   : > { %v6171_v58 = vpop.eup %6170 }
0x1801   : > { %5362 = vmatmul.mubr.msk.f32.vlgmr.msra.gmra.mrb[48].mxu0 %vm720_vm5, %v6171_v58 }
0x1802   : > { %5933 = vmatpush3.bf16.msra.mxu0 %v6423_v6  ;;  %5399 = vmatprep.mubr.msk.f32.mxu0 %vm6266_vm2, %v6265_v3 }
0x1803   : > { %5934 = vmatprep.subr.bf16.mxu0 %v6267_v7 }
0x18d4   : > { %v2834_v59 = vpop.f32.mrb[48].mxu0 }
0x18d5   : > { %v2835_v61 = vadd.f32 %v6614_v15, %v2834_v59  ;;  %v5363_v62 = vpop.f32.mrb[49].mxu0 }
0x18d7   : > { %v2838_v0 = vmul.f32 %v2835_v61, %v6469_v23 }
0x18d9   : > { %5393 = vmatmul.mubr.msk.f32.vlgmr.msra.gmra.mrb[10].mxu1 %vm943_vm6, %v2838_v0 }
0x18da   : > { %5954 = vmatpush3.bf16.msra.mxu1 %v6539_v52  ;;  %5463 = vmatprep.mubr.msk.f32.mxu1 %vm6266_vm2, %v6265_v3 }
0x18db   : > { %5955 = vmatprep.subr.bf16.mxu1 %v6267_v7 }
0x18de   : > { %5957 = vmatpush3.bf16.msra.mxu1 %v6545_v54 }
0x18df   : > { %5958 = vmatprep.subr.bf16.mxu1 %v6267_v7 }
0x18e2   : > { %5960 = vmatpush3.bf16.msra.mxu1 %v6555_v57 }
0x18e3   : > { %5961 = vmatprep.subr.bf16.mxu1 %v6267_v7 }
0x18e6   : > { %5963 = vmatpush3.bf16.msra.mxu1 %v6565_v60 }
0x18e7   : > { %5964 = vmatprep.subr.bf16.mxu1 %v6267_v7 }
0x18ea   : > { %5966 = vmatpush3.bf16.msra.mxu1 %v6575_v63 }
0x18eb   : > { %5967 = vmatprep.subr.bf16.mxu1 %v6267_v7 }
0x18ee   : > { %5969 = vmatpush3.bf16.msra.mxu1 %v6585_v2 }
0x18ef   : > { %5970 = vmatprep.subr.bf16.mxu1 %v6267_v7 }
0x18f2   : > { %5972 = vmatpush3.bf16.msra.mxu1 %v6607_v14 }
0x18f3   : > { %5994 = vmatprep.subr.bf16.mxu1 %v6267_v7 }
0x19ac   : > { %v2908_v1 = vpop.f32.mrb[10].mxu1 }
0x19ad   : > { %v2912_v5 = vadd.f32 %v2908_v1, %v2533_v35  ;;  %v5394_v8 = vpop.f32.mrb[11].mxu1 }
0x19ae   : > { %v3676_v8 = vpop.permute.xlu0 %3675 }
0x19af   : > { %5400 = vmatmul.mubr.msk.f32.vlgmr.msra.gmra.mrb[50].mxu0 %vm644_vm4, %v2912_v5 }
0x19b0   : > { %5936 = vmatpush3.bf16.msra.mxu0 %v6450_v17  ;;  %5410 = vmatprep.mubr.msk.f32.mxu0 %vm6266_vm2, %v6265_v3 }
0x19b1   : > { %5937 = vmatprep.subr.bf16.mxu0 %v6267_v7 }
0x19b4   : > { %5939 = vmatpush3.bf16.msra.mxu0 %v6460_v20 }
0x19b5   : > { %5940 = vmatprep.subr.bf16.mxu0 %v6267_v7 }
0x1a82   : > { %v2990_v12 = vpop.f32.mrb[50].mxu0 }
0x1a83   : > { %v2991_v13 = vadd.f32 %v2990_v12, %v2920_v11  ;;  %v5401_v16 = vpop.f32.mrb[51].mxu0  ;;  %v3678_v11 = vmul.f32 %v7001_v10, %v3676_v8 }
0x1a85   : > { %v2994_v18 = vadd.f32 %v6475_v26, %v2991_v13 }
0x1a87   : > { %v2995_v19 = vmax.f32 %v2994_v18, 0.0  ;;  %v6181_v18 = vld [vmem:[%s7143_s5] ss:$0 sm:$0xff] }
0x1a89   : > { %5411 = vmatmul.mubr.msk.f32.vlgmr.msra.gmra.mrb[52].mxu0 %vm720_vm5, %v2995_v19 }
0x1a8a   : > { %5942 = vmatpush3.bf16.msra.mxu0 %v6484_v33  ;;  %5421 = vmatprep.mubr.msk.f32.mxu0 %vm6266_vm2, %v6265_v3 }
0x1a8b   : > { %5943 = vmatprep.subr.bf16.mxu0 %v6267_v7 }
0x1a8e   : > { %5945 = vmatpush3.bf16.msra.mxu0 %v6497_v37 }
0x1a8f   : > { %5946 = vmatprep.subr.bf16.mxu0 %v6267_v7 }
0x1b5c   : > { %v3065_v22 = vpop.f32.mrb[52].mxu0 }
0x1b5d   : > { %v3066_v24 = vadd.f32 %v6504_v38, %v3065_v22  ;;  %v5412_v25 = vpop.f32.mrb[53].mxu0 }
0x1b5e   : > { %v6182_v25 = vld [vmem:[%s7145_s7] ss:$0 sm:$0xff] }
0x1b5f   : > { %v3069_v27 = vmax.f32 %v3066_v24, 0.0 }
0x1b61   : > { %5422 = vmatmul.mubr.msk.f32.vlgmr.msra.gmra.mrb[54].mxu0 %vm720_vm5, %v3069_v27 }
0x1b62   : > { %5948 = vmatpush3.bf16.msra.mxu0 %v6519_v46  ;;  %5432 = vmatprep.mubr.msk.f32.mxu0 %vm6266_vm2, %v6265_v3 }
0x1b63   : > { %5949 = vmatprep.subr.bf16.mxu0 %v6267_v7 }
0x1b66   : > { %5951 = vmatpush3.bf16.msra.mxu0 %v6525_v48 }
0x1b67   : > { %5973 = vmatprep.subr.bf16.mxu0 %v6267_v7 }
0x1c34   : > { %v3139_v28 = vpop.f32.mrb[54].mxu0 }
0x1c35   : > { %v3140_v29 = vadd.f32 %v6593_v4, %v3139_v28  ;;  %v5423_v9 = vpop.f32.mrb[55].mxu0 }
0x1c37   : > { %6172 = vtanh.f32 %v3140_v29 }
0x1c41   : > { %v6173_v30 = vpop.eup %6172 }
0x1c42   : > { %5433 = vmatmul.mubr.msk.f32.vlgmr.msra.gmra.mrb[56].mxu0 %vm720_vm5, %v6173_v30 }
0x1c43   : > { %5975 = vmatpush3.bf16.msra.mxu0 %v6423_v6  ;;  %5470 = vmatprep.mubr.msk.f32.mxu0 %vm6266_vm2, %v6265_v3 }
0x1c44   : > { %5976 = vmatprep.subr.bf16.mxu0 %v6267_v7 }
0x1d15   : > { %v3213_v31 = vpop.f32.mrb[56].mxu0 }
0x1d16   : > { %v3214_v32 = vadd.f32 %v6614_v15, %v3213_v31  ;;  %v5434_v34 = vpop.f32.mrb[57].mxu0 }
0x1d18   : > { %v3217_v35 = vmul.f32 %v3214_v32, %v6469_v23 }
0x1d1a   : > { %5464 = vmatmul.mubr.msk.f32.vlgmr.msra.gmra.mrb[12].mxu1 %vm943_vm6, %v3217_v35 }
0x1d1b   : > { %5996 = vmatpush3.bf16.msra.mxu1 %v6539_v52  ;;  %5534 = vmatprep.mubr.msk.f32.mxu1 %vm6266_vm2, %v6265_v3 }
0x1d1c   : > { %5997 = vmatprep.subr.bf16.mxu1 %v6267_v7 }
0x1d1f   : > { %5999 = vmatpush3.bf16.msra.mxu1 %v6545_v54 }
0x1d20   : > { %6000 = vmatprep.subr.bf16.mxu1 %v6267_v7 }
0x1d23   : > { %6002 = vmatpush3.bf16.msra.mxu1 %v6555_v57 }
0x1d24   : > { %6003 = vmatprep.subr.bf16.mxu1 %v6267_v7 }
0x1d27   : > { %6005 = vmatpush3.bf16.msra.mxu1 %v6565_v60 }
0x1d28   : > { %6006 = vmatprep.subr.bf16.mxu1 %v6267_v7 }
0x1d2b   : > { %6008 = vmatpush3.bf16.msra.mxu1 %v6575_v63 }
0x1d2c   : > { %6009 = vmatprep.subr.bf16.mxu1 %v6267_v7 }
0x1d2f   : > { %6011 = vmatpush3.bf16.msra.mxu1 %v6585_v2 }
0x1d30   : > { %6012 = vmatprep.subr.bf16.mxu1 %v6267_v7 }
0x1d33   : > { %6014 = vmatpush3.bf16.msra.mxu1 %v6607_v14 }
0x1d34   : > { %6036 = vmatprep.subr.bf16.mxu1 %v6267_v7 }
0x1ded   : > { %v3287_v36 = vpop.f32.mrb[12].mxu1 }
0x1dee   : > { %v3291_v39 = vadd.f32 %v3287_v36, %v2912_v5  ;;  %v5465_v40 = vpop.f32.mrb[13].mxu1 }
0x1df0   : > { %5471 = vmatmul.mubr.msk.f32.vlgmr.msra.gmra.mrb[58].mxu0 %vm644_vm4, %v3291_v39 }
0x1df1   : > { %5978 = vmatpush3.bf16.msra.mxu0 %v6450_v17  ;;  %5481 = vmatprep.mubr.msk.f32.mxu0 %vm6266_vm2, %v6265_v3 }
0x1df2   : > { %5979 = vmatprep.subr.bf16.mxu0 %v6267_v7 }
0x1df5   : > { %5981 = vmatpush3.bf16.msra.mxu0 %v6460_v20 }
0x1df6   : > { %5982 = vmatprep.subr.bf16.mxu0 %v6267_v7 }
0x1ec3   : > { %v3369_v43 = vpop.f32.mrb[58].mxu0 }
0x1ec4   : > { %v3370_v44 = vadd.f32 %v3369_v43, %v3299_v42  ;;  %v5472_v45 = vpop.f32.mrb[59].mxu0 }
0x1ec6   : > { %v3373_v47 = vadd.f32 %v6475_v26, %v3370_v44 }
0x1ec8   : > { %v3374_v49 = vmax.f32 %v3373_v47, 0.0 }
0x1eca   : > { %5482 = vmatmul.mubr.msk.f32.vlgmr.msra.gmra.mrb[60].mxu0 %vm720_vm5, %v3374_v49 }
0x1ecb   : > { %5984 = vmatpush3.bf16.msra.mxu0 %v6484_v33  ;;  %5492 = vmatprep.mubr.msk.f32.mxu0 %vm6266_vm2, %v6265_v3 }
0x1ecc   : > { %5985 = vmatprep.subr.bf16.mxu0 %v6267_v7 }
0x1ecf   : > { %5987 = vmatpush3.bf16.msra.mxu0 %v6497_v37 }
0x1ed0   : > { %5988 = vmatprep.subr.bf16.mxu0 %v6267_v7 }
0x1f9d   : > { %v3444_v21 = vpop.f32.mrb[60].mxu0 }
0x1f9e   : > { %v3445_v50 = vadd.f32 %v6504_v38, %v3444_v21  ;;  %v5483_v51 = vpop.f32.mrb[61].mxu0 }
0x1fa0   : > { %v3448_v53 = vmax.f32 %v3445_v50, 0.0 }
0x1fa2   : > { %5493 = vmatmul.mubr.msk.f32.vlgmr.msra.gmra.mrb[62].mxu0 %vm720_vm5, %v3448_v53 }
0x1fa3   : > { %5990 = vmatpush3.bf16.msra.mxu0 %v6519_v46  ;;  %5503 = vmatprep.mubr.msk.f32.mxu0 %vm6266_vm2, %v6265_v3 }
0x1fa4   : > { %5991 = vmatprep.subr.bf16.mxu0 %v6267_v7 }
0x1fa7   : > { %5993 = vmatpush3.bf16.msra.mxu0 %v6525_v48 }
0x1fa8   : > { %6015 = vmatprep.subr.bf16.mxu0 %v6267_v7 }
0x2075   : > { %v3518_v26 = vpop.f32.mrb[62].mxu0 }
0x2076   : > { %v3519_v55 = vadd.f32 %v6593_v4, %v3518_v26  ;;  %v5494_v56 = vpop.f32.mrb[63].mxu0 }
0x2078   : > { %6174 = vtanh.f32 %v3519_v55 }
0x2082   : > { %v6175_v38 = vpop.eup %6174 }
0x2083   : > { %5504 = vmatmul.mubr.msk.f32.vlgmr.msra.gmra.mrb[64].mxu0 %vm720_vm5, %v6175_v38 }
0x2084   : > { %6017 = vmatpush3.bf16.msra.mxu0 %v6423_v6  ;;  %5541 = vmatprep.mubr.msk.f32.mxu0 %vm6266_vm2, %v6265_v3 }
0x2085   : > { %6018 = vmatprep.subr.bf16.mxu0 %v6267_v7 }
0x2156   : > { %v3592_v58 = vpop.f32.mrb[64].mxu0 }
0x2157   : > { %v3593_v59 = vadd.f32 %v6614_v15, %v3592_v58  ;;  %v5505_v61 = vpop.f32.mrb[65].mxu0 }
0x2159   : > { %v3596_v62 = vmul.f32 %v3593_v59, %v6469_v23 }
0x215b   : > { %5535 = vmatmul.mubr.msk.f32.vlgmr.msra.gmra.mrb[14].mxu1 %vm943_vm6, %v3596_v62 }
0x215c   : > { %6038 = vmatpush3.bf16.msra.mxu1 %v6539_v52  ;;  %5605 = vmatprep.mubr.msk.f32.mxu1 %vm6266_vm2, %v6265_v3 }
0x215d   : > { %6039 = vmatprep.subr.bf16.mxu1 %v6267_v7 }
0x2160   : > { %6041 = vmatpush3.bf16.msra.mxu1 %v6545_v54 }
0x2161   : > { %6042 = vmatprep.subr.bf16.mxu1 %v6267_v7 }
0x2164   : > { %6044 = vmatpush3.bf16.msra.mxu1 %v6555_v57 }
0x2165   : > { %6045 = vmatprep.subr.bf16.mxu1 %v6267_v7 }
0x2168   : > { %6047 = vmatpush3.bf16.msra.mxu1 %v6565_v60 }
0x2169   : > { %6048 = vmatprep.subr.bf16.mxu1 %v6267_v7 }
0x216c   : > { %6050 = vmatpush3.bf16.msra.mxu1 %v6575_v63 }
0x216d   : > { %6051 = vmatprep.subr.bf16.mxu1 %v6267_v7 }
0x2170   : > { %6053 = vmatpush3.bf16.msra.mxu1 %v6585_v2 }
0x2171   : > { %6054 = vmatprep.subr.bf16.mxu1 %v6267_v7 }
0x2174   : > { %6056 = vmatpush3.bf16.msra.mxu1 %v6607_v14 }
0x2175   : > { %6078 = vmatprep.subr.bf16.mxu1 %v6267_v7 }
0x222e   : > { %v3666_v0 = vpop.f32.mrb[14].mxu1 }
0x222f   : > { %v6988_v1 = vadd.f32 %v3666_v0, %v3291_v39  ;;  %v5536_v5 = vpop.f32.mrb[15].mxu1 }
0x2231   : > { %5542 = vmatmul.mubr.msk.f32.vlgmr.msra.gmra.mrb[66].mxu0 %vm644_vm4, %v6988_v1 }
0x2232   : > { %6020 = vmatpush3.bf16.msra.mxu0 %v6450_v17  ;;  %5552 = vmatprep.mubr.msk.f32.mxu0 %vm6266_vm2, %v6265_v3 }
0x2233   : > { %6021 = vmatprep.subr.bf16.mxu0 %v6267_v7 }
0x2236   : > { %6023 = vmatpush3.bf16.msra.mxu0 %v6460_v20 }
0x2237   : > { %6024 = vmatprep.subr.bf16.mxu0 %v6267_v7 }
0x2304   : > { %v3748_v12 = vpop.f32.mrb[66].mxu0 }
0x2305   : > { %v3749_v13 = vadd.f32 %v3748_v12, %v3678_v11  ;;  %v5543_v16 = vpop.f32.mrb[67].mxu0 }
0x2307   : > { %v3752_v19 = vadd.f32 %v6181_v18, %v3749_v13 }
0x2309   : > { %v3753_v22 = vmax.f32 %v3752_v19, 0.0 }
0x230b   : > { %5553 = vmatmul.mubr.msk.f32.vlgmr.msra.gmra.mrb[68].mxu0 %vm720_vm5, %v3753_v22 }
0x230c   : > { %6026 = vmatpush3.bf16.msra.mxu0 %v6484_v33  ;;  %5563 = vmatprep.mubr.msk.f32.mxu0 %vm6266_vm2, %v6265_v3 }
0x230d   : > { %6027 = vmatprep.subr.bf16.mxu0 %v6267_v7 }
0x2310   : > { %6029 = vmatpush3.bf16.msra.mxu0 %v6497_v37 }
0x2311   : > { %6030 = vmatprep.subr.bf16.mxu0 %v6267_v7 }
0x23de   : > { %v3823_v24 = vpop.f32.mrb[68].mxu0 }
0x23df   : > { %v3824_v27 = vadd.f32 %v6182_v25, %v3823_v24  ;;  %v5554_v28 = vpop.f32.mrb[69].mxu0 }
0x23e1   : > { %v3827_v29 = vmax.f32 %v3824_v27, 0.0 }
0x23e3   : > { %5564 = vmatmul.mubr.msk.f32.vlgmr.msra.gmra.mrb[70].mxu0 %vm720_vm5, %v3827_v29 }
0x23e4   : > { %6032 = vmatpush3.bf16.msra.mxu0 %v6519_v46  ;;  %5574 = vmatprep.mubr.msk.f32.mxu0 %vm6266_vm2, %v6265_v3 }
0x23e5   : > { %6033 = vmatprep.subr.bf16.mxu0 %v6267_v7 }
0x23e8   : > { %6035 = vmatpush3.bf16.msra.mxu0 %v6525_v48 }
0x23e9   : > { %6057 = vmatprep.subr.bf16.mxu0 %v6267_v7 }
0x24b6   : > { %v3897_v9 = vpop.f32.mrb[70].mxu0 }
0x24b7   : > { %v3898_v30 = vadd.f32 %v6593_v4, %v3897_v9  ;;  %v5565_v31 = vpop.f32.mrb[71].mxu0 }
0x24b9   : > { %6176 = vtanh.f32 %v3898_v30 }
0x24c3   : > { %v6177_v32 = vpop.eup %6176 }
0x24c4   : > { %5575 = vmatmul.mubr.msk.f32.vlgmr.msra.gmra.mrb[72].mxu0 %vm720_vm5, %v6177_v32 }
0x24c5   : > { %6059 = vmatpush3.bf16.msra.mxu0 %v6423_v6  ;;  %5612 = vmatprep.mubr.msk.f32.mxu0 %vm6266_vm2, %v6265_v3 }
0x24c6   : > { %6060 = vmatprep.subr.bf16.mxu0 %v6267_v7 }
0x2597   : > { %v3971_v34 = vpop.f32.mrb[72].mxu0 }
0x2598   : > { %v3972_v35 = vadd.f32 %v6614_v15, %v3971_v34  ;;  %v5576_v36 = vpop.f32.mrb[73].mxu0 }
0x259a   : > { %v3975_v39 = vmul.f32 %v3972_v35, %v6469_v23 }
0x259c   : > { %5606 = vmatmul.mubr.msk.f32.vlgmr.msra.gmra.mrb[16].mxu1 %vm943_vm6, %v3975_v39 }
0x259d   : > { %6080 = vmatpush3.bf16.msra.mxu1 %v6539_v52  ;;  %5676 = vmatprep.mubr.msk.f32.mxu1 %vm6266_vm2, %v6265_v3 }
0x259e   : > { %6081 = vmatprep.subr.bf16.mxu1 %v6267_v7 }
0x25a1   : > { %6083 = vmatpush3.bf16.msra.mxu1 %v6545_v54 }
0x25a2   : > { %6084 = vmatprep.subr.bf16.mxu1 %v6267_v7 }
0x25a5   : > { %6086 = vmatpush3.bf16.msra.mxu1 %v6555_v57  ;;  %v4055_v57 = vpop.permute.xlu1 %4054 }
0x25a6   : > { %6087 = vmatprep.subr.bf16.mxu1 %v6267_v7 }
0x25a9   : > { %6089 = vmatpush3.bf16.msra.mxu1 %v6565_v60  ;;  %v4057_v60 = vmul.f32 %v7001_v10, %v4055_v57 }
0x25aa   : > { %6090 = vmatprep.subr.bf16.mxu1 %v6267_v7 }
0x25ad   : > { %6092 = vmatpush3.bf16.msra.mxu1 %v6575_v63 }
0x25ae   : > { %6093 = vmatprep.subr.bf16.mxu1 %v6267_v7 }
0x25b1   : > { %6095 = vmatpush3.bf16.msra.mxu1 %v6585_v2 }
0x25b2   : > { %6096 = vmatprep.subr.bf16.mxu1 %v6267_v7 }
0x25b5   : > { %6098 = vmatpush3.bf16.msra.mxu1 %v6607_v14 }
0x266f   : > { %v4045_v6 = vpop.f32.mrb[16].mxu1 }
0x2670   : > { %v4049_v52 = vadd.f32 %v4045_v6, %v6988_v1  ;;  %v5607_v54 = vpop.f32.mrb[17].mxu1 }
0x2672   : > { %5613 = vmatmul.mubr.msk.f32.vlgmr.msra.gmra.mrb[74].mxu0 %vm644_vm4, %v4049_v52 }
0x2673   : > { %6062 = vmatpush3.bf16.msra.mxu0 %v6450_v17  ;;  %5623 = vmatprep.mubr.msk.f32.mxu0 %vm6266_vm2, %v6265_v3 }
0x2674   : > { %6063 = vmatprep.subr.bf16.mxu0 %v6267_v7 }
0x2677   : > { %6065 = vmatpush3.bf16.msra.mxu0 %v6460_v20 }
0x2678   : > { %6066 = vmatprep.subr.bf16.mxu0 %v6267_v7 }
0x2745   : > { %v4127_v63 = vpop.f32.mrb[74].mxu0 }
0x2746   : > { %v4128_v2 = vadd.f32 %v4127_v63, %v4057_v60  ;;  %v5614_v4 = vpop.f32.mrb[75].mxu0 }
0x2748   : > { %v4131_v14 = vadd.f32 %v6181_v18, %v4128_v2 }
0x274a   : > { %v4132_v15 = vmax.f32 %v4131_v14, 0.0 }
0x274c   : > { %5624 = vmatmul.mubr.msk.f32.vlgmr.msra.gmra.mrb[76].mxu0 %vm720_vm5, %v4132_v15 }
0x274d   : > { %6068 = vmatpush3.bf16.msra.mxu0 %v6484_v33  ;;  %5634 = vmatprep.mubr.msk.f32.mxu0 %vm6266_vm2, %v6265_v3 }
0x274e   : > { %6069 = vmatprep.subr.bf16.mxu0 %v6267_v7 }
0x2751   : > { %6071 = vmatpush3.bf16.msra.mxu0 %v6497_v37  ;;  %v6183_v37 = vld [vmem:[%s7145_s7 + $0x1] ss:$0 sm:$0xff] }
0x2752   : > { %6072 = vmatprep.subr.bf16.mxu0 %v6267_v7 }
0x281f   : > { %v4202_v17 = vpop.f32.mrb[76].mxu0 }
0x2820   : > { %v4203_v20 = vadd.f32 %v6182_v25, %v4202_v17  ;;  %v5625_v40 = vpop.f32.mrb[77].mxu0 }
0x2822   : > { %v4206_v41 = vmax.f32 %v4203_v20, 0.0 }
0x2824   : > { %5635 = vmatmul.mubr.msk.f32.vlgmr.msra.gmra.mrb[78].mxu0 %vm720_vm5, %v4206_v41 }
0x2825   : > { %6074 = vmatpush3.bf16.msra.mxu0 %v6519_v46  ;;  %5645 = vmatprep.mubr.msk.f32.mxu0 %vm6266_vm2, %v6265_v3 }
0x2826   : > { %6075 = vmatprep.subr.bf16.mxu0 %v6267_v7  ;;  %v6184_v7 = vld [vmem:[%s7147_s9] ss:$0 sm:$0xff] }
0x2829   : > { %6077 = vmatpush3.bf16.msra.mxu0 %v6525_v48 }
0x28f7   : > { %v4276_v33 = vpop.f32.mrb[78].mxu0 }
0x28f8   : > { %v4277_v42 = vadd.f32 %v6183_v37, %v4276_v33  ;;  %v5636_v43 = vpop.f32.mrb[79].mxu0 }
0x28fa   : > { %6178 = vtanh.f32 %v4277_v42 }
0x2904   : > { %v6179_v44 = vpop.eup %6178 }
0x2905   : > { %5646 = vmatmul.mubr.msk.f32.vlgmr.msra.gmra.mrb[80].mxu0 %vm720_vm5, %v6179_v44 }
0x29d8   : > { %v4350_v3 = vpop.f32.mrb[80].mxu0 }
0x29d9   : > { %v4351_v46 = vadd.f32 %v6184_v7, %v4350_v3  ;;  %v5647_v48 = vpop.f32.mrb[81].mxu0 }
0x29db   : > { %v4354_v45 = vmul.f32 %v4351_v46, %v6469_v23 }
0x29dd   : > { %5677 = vmatmul.mubr.msk.f32.vlgmr.msra.gmra.mrb[18].mxu1 %vm943_vm6, %v4354_v45 }
0x2ab0   : > { %v4424_v47 = vpop.f32.mrb[18].mxu1 }
0x2ab1   : > { %v4428_v49 = vadd.f32 %v4424_v47, %v4049_v52  ;;  %v5678_v21 = vpop.f32.mrb[19].mxu1 }
0x2ab3   : > { %4429 = vst.msk [vmem:[#allocation2] sm:$0xff] %vm644_vm4, %v4428_v49  ;;  %4430 = vst.msk [vmem:[%s463_s15] sm:$0xff] %vm644_vm4, %v4428_v49 }
0x2ab4   : > { %6198 = shalt.err (!%p6195_p7)
}
0x2ab5   : > { %s6199_s15 = scalar_lea.hbm %s7085_s25, 128  ;;  %s6203_s14 = scalar_lea.hbm %s7150_s12, 512 }
0x2ab6   : > { %p6200_p9 = scmp.ne.s32.totalorder %s7085_s25, %s6199_s15  ;;  %p6204_p12 = scmp.lt.u32.totalorder %s7085_s25, %s7150_s12 }
0x2ab7   : > { %p6205_p13 = scmp.lt.u32.totalorder %s6203_s14, %s6199_s15  ;;  %p6207_p1 = scmp.lt.u32.totalorder %s6199_s15, %s7085_s25 }
0x2ab8   : > { %p6201_p10 = pnand %p6200_p9, %p6375_p4 }
0x2ab9   : > { %p6206_p0 = por %p6205_p13, %p6204_p12 }
0x2aba   : > { %p6202_p11 = pneg %p6201_p10 }
0x2abb   : > { %p6208_p2 = por %p6207_p1, %p6206_p0 }
0x2abd   : > { %p6209_p3 = pnand %p6208_p2, %p6202_p11 }
0x2abf   : > { %6212 = shalt.err (!%p6209_p3)
}
0x2ac0   : > { %6099 = dma.vmem_to_hbm [thread:$0]  (%p6375_p4), %s7087_s27, 128, %s7085_s25, %s4432_s29  }
0x2ac1 PF: > { %s7166_s21 = sld [smem:[#allocation6_spill]]  ;;  %p6105_p5 = scmp.ge.s32.totalorder %s6263_s26, 2 }
0x2ac3   : > { %p6102_p6 = pnand %p6105_p5, %p6382_p8 }
0x2ac7   : > { %s4458_s16 = sand.u32 1, %s7166_s21  }
0x2ac8   : > { %s4459_s17 = scalar_lea.sflag [#allocation4], %s4458_s16 }
0x2ac9   : > { %6238 = dma.done.wait (!%p6102_p6), %s4459_s17, 128  }
0x2aca   : > { %6240 = vsyncadd (!%p6102_p6), %s4459_s17, 4294967168  ;;  %s25_s26 = sadd.s32 1, %s6263_s26   ;;  %s7168_s19 = sld [smem:[#allocation7_spill]] }
0x2acb   : > { %p22_p7 = scmp.ge.s32.totalorder %s25_s26, 6   ;;  %s7169_s23 = sld [smem:[#allocation11_spill]] }
0x2acc   : > { %s7170_s24 = sld [smem:[#allocation8_spill]]  ;;  %s7171_s25 = sld [smem:[#allocation9_spill]] }
0x2acd   : > { %s7172_s21 = smov %s6247_s22  ;;  %24 = sbr.rel (!%p22_p7) target bundleno = 4 (0x4), region = 124 }
0x2ad0   : > { %s7173_s22 = smov %s7168_s19 }
0x2ad4   :  { %4464 = vsyncpa [#allocation4], 1 }
0x2ad5   :  { %4466 = vsyncpa [#allocation4 + $0x1], 1 }

</bundles_post_ra>
